<compile_context>
chip_gen: v7x
topology: tpu7x:2x2x1
jax: 0.10.0
libtpu: 0.0.40
codegen_flags: <defaults>
</compile_context>

<pallas_src>
import numpy as np

import jax
import jax.numpy as jnp
from jax.experimental import pallas as pl
from jax.experimental.pallas import tpu as pltpu


# ---------------------------------------------------------------------------
# Kernel (one batch tile; everything VMEM-resident; F batch rows per lane group)
# ---------------------------------------------------------------------------
def tensor_network_kernel(x1_ref, x2_ref, w1t_ref, b1_ref, rm_ref, tm_ref,
                          wbil_ref, wb1_ref, wb2_ref, bvec_ref, w2t_ref,
                          b2_ref, out_ref):
    """Folded layout: a row holds F batch rows side by side on the lane axis.

    x1, x2   : (TBF, F*H)     folded embeddings (compute dtype)
    w1t      : (F*H, F*K)     blockdiag(fc1.weight.T)
    b1       : (1, F*K)       fc1.bias tiled F times (f32)
    rm       : (F*K, F*K*K)   blockdiag(repeat matrix)  rm[i, i*K+j] = 1
    tm       : (F*K, F*K*K)   blockdiag(tile   matrix)  tm[j, i*K+j] = 1
    wbil     : (F*K*K, F*K)   blockdiag(weight_matrix.reshape(K*K, K))
    wb1, wb2 : (F*K, F*K)     blockdiag(weight_matrix_block halves, transposed)
    bvec     : (1, F*K)       bias.view(-1) tiled F times (f32)
    w2t      : (F*K, F*H)     blockdiag(fc2.weight.T)
    b2       : (1, F*H)       fc2.bias tiled F times (f32)
    out      : (TBF, F*H)
    """
    cdt = w1t_ref.dtype                      # matmul operand dtype (f32 or bf16)

    # --- fc1 on both embeddings (block-diagonal weight), f32 accumulation ---
    e1 = jnp.dot(x1_ref[...].astype(cdt), w1t_ref[...],
                 preferred_element_type=jnp.float32) + b1_ref[...]
    e2 = jnp.dot(x2_ref[...].astype(cdt), w1t_ref[...],
                 preferred_element_type=jnp.float32) + b1_ref[...]
    e1c = e1.astype(cdt)
    e2c = e2.astype(cdt)

    # --- bilinear tensor scoring, entirely on the MXU ------------------------
    # Selection matrices are one-hot, so accumulating directly in cdt is exact;
    # this keeps the two (TBF, F*K*K) slabs in the narrow dtype.
    e1rep = jnp.dot(e1c, rm_ref[...], preferred_element_type=cdt)
    e2til = jnp.dot(e2c, tm_ref[...], preferred_element_type=cdt)
    outer = e1rep * e2til                                           # (TBF, F*K*K)
    # scoring[b, d] = sum_{i,j} e1[b,i] * W[i,j,d] * e2[b,j]
    scoring = jnp.dot(outer, wbil_ref[...], preferred_element_type=jnp.float32)

    # --- block scoring: cat(e1, e2) @ Wblock.T as two matmuls (no concat) ----
    block = (jnp.dot(e1c, wb1_ref[...], preferred_element_type=jnp.float32)
             + jnp.dot(e2c, wb2_ref[...], preferred_element_type=jnp.float32))

    # --- relu epilogue kept in f32 (v5e has no bf16 VPU) ---------------------
    s = jnp.maximum(scoring + block + bvec_ref[...], 0.0)           # (TBF, F*K)

    # --- fc2 -----------------------------------------------------------------
    out = jnp.dot(s.astype(cdt), w2t_ref[...], preferred_element_type=jnp.float32)
    out_ref[...] = (out + b2_ref[...]).astype(out_ref.dtype)


# ---------------------------------------------------------------------------
# Parameter init (mirrors the PyTorch module) and one-time re-layout
# ---------------------------------------------------------------------------
def xavier_uniform(key, shape, fan_in, fan_out, dtype=jnp.float32):
    bound = (6.0 / (fan_in + fan_out)) ** 0.5
    return jax.random.uniform(key, shape, dtype, minval=-bound, maxval=bound)


def init_params(key, k_feature, hid_dim, k_dim):
    assert k_feature == k_dim, "forward pass only consistent when k_feature == k_dim"
    ks = jax.random.split(key, 7)
    return {
        "weight_matrix": xavier_uniform(ks[0], (k_feature, k_feature, k_dim),
                                        k_feature, k_feature * k_dim),
        "weight_matrix_block": xavier_uniform(ks[1], (k_dim, 2 * k_feature),
                                              2 * k_feature, k_dim),
        "bias": xavier_uniform(ks[2], (k_dim, 1), 1, k_dim),
        "fc1_w": xavier_uniform(ks[3], (k_dim, hid_dim), hid_dim, k_dim),
        "fc1_b": xavier_uniform(ks[4], (k_dim,), hid_dim, k_dim),
        "fc2_w": xavier_uniform(ks[5], (hid_dim, k_dim), k_dim, hid_dim),
        "fc2_b": xavier_uniform(ks[6], (hid_dim,), k_dim, hid_dim),
    }


def _fold_factor(hid_dim):
    """How many batch rows pack into 128 lanes (lane-dense IO)."""
    if hid_dim <= 128 and 128 % hid_dim == 0:
        return 128 // hid_dim
    return 1


def prepare_params(params, compute_dtype=jnp.float32):
    """One-time parameter re-layout (hoisted out of the per-forward hot path).

    compute_dtype=bf16 is the fast path on ALL generations (v5e's MXU is
    bf16-native; only its VPU/EUP lack bf16, and the epilogue stays f32).
    """
    K, H = params["fc1_w"].shape          # fc1: Linear(H -> K)
    F = _fold_factor(H)
    cdt = compute_dtype

    eyeK = jnp.eye(K, dtype=jnp.float32)
    onesK = jnp.ones((1, K), dtype=jnp.float32)
    rm = jnp.kron(eyeK, onesK)            # (K, K*K): rm[i, i*K + j] = 1  (repeat)
    tm = jnp.kron(onesK, eyeK)            # (K, K*K): tm[j, i*K + j] = 1  (tile)
    wbil = params["weight_matrix"].reshape(K * K, K)          # W[i*K+j, d]
    wb1 = params["weight_matrix_block"][:, :K].T              # (K, K)
    wb2 = params["weight_matrix_block"][:, K:].T              # (K, K)
    w1t = params["fc1_w"].T                                   # (H, K)
    w2t = params["fc2_w"].T                                   # (K, H)

    eyeF = jnp.eye(F, dtype=jnp.float32)
    bd = lambda m: jnp.kron(eyeF, m)                          # block-diagonal fold
    tile_row = lambda v: jnp.tile(jnp.reshape(v, (1, -1)), (1, F))

    return {
        "w1t": bd(w1t).astype(cdt),                           # (F*H, F*K)
        "b1": tile_row(params["fc1_b"]).astype(jnp.float32),  # (1, F*K)
        "rm": bd(rm).astype(cdt),                             # (F*K, F*K*K)
        "tm": bd(tm).astype(cdt),                             # (F*K, F*K*K)
        "wbil": bd(wbil).astype(cdt),                         # (F*K*K, F*K)
        "wb1": bd(wb1).astype(cdt),                           # (F*K, F*K)
        "wb2": bd(wb2).astype(cdt),                           # (F*K, F*K)
        "bvec": tile_row(params["bias"].reshape(-1)).astype(jnp.float32),
        "w2t": bd(w2t).astype(cdt),                           # (F*K, F*H)
        "b2": tile_row(params["fc2_b"]).astype(jnp.float32),  # (1, F*H)
    }


# ---------------------------------------------------------------------------
# Forward wrapper (jit this)
# ---------------------------------------------------------------------------
def tensor_network_forward(embedding_1, embedding_2, prepared, *,
                           block_b=4096, out_dtype=jnp.float32):
    x1 = jnp.squeeze(embedding_1, axis=1)                    # (B, H)
    x2 = jnp.squeeze(embedding_2, axis=1)                    # (B, H)
    B, H = x1.shape
    F = _fold_factor(H)
    FK = prepared["w1t"].shape[1]
    K = FK // F
    cdt = prepared["w1t"].dtype
    cdt_sz = np.dtype(cdt).itemsize
    act_sz = cdt_sz                                          # activations fed in cdt
    out_sz = np.dtype(out_dtype).itemsize

    # --- generation-aware limits (static, queried at trace time) -------------
    kind = ""
    try:
        kind = jax.devices()[0].device_kind.lower()
    except Exception:
        pass
    is_v7 = "v7" in kind
    multi_tc = is_v7 or ("v4" in kind) or ("v5p" in kind)
    vmem_budget = (44 if is_v7 else 96) * 1024 * 1024        # tile-sizing budget
    vmem_phys_cap = (56 if is_v7 else 110) * 1024 * 1024     # vmem_limit clamp

    weight_args = (prepared["w1t"], prepared["b1"], prepared["rm"], prepared["tm"],
                   prepared["wbil"], prepared["wb1"], prepared["wb2"],
                   prepared["bvec"], prepared["w2t"], prepared["b2"])
    weight_bytes = sum(int(a.size) * a.dtype.itemsize for a in weight_args)

    # Per-batch-row VMEM estimate: double-buffered IO blocks + live intermediates.
    per_row = (4 * H * act_sz                 # x1, x2 blocks, double-buffered
               + 2 * H * out_sz               # out block, double-buffered
               + 3 * K * K * cdt_sz           # e1rep, e2til, outer
               + K * (20 + 2 * cdt_sz)        # e1,e2,scoring,block,s (f32) + casts
               + 4 * H)                       # fc2 f32 result before cast
    row_align = 8 * F                         # folded rows stay sublane-aligned

    tb_cap = max(row_align,
                 ((vmem_budget - 2 * weight_bytes) // per_row) // row_align * row_align)
    b_pad = pl.cdiv(B, row_align) * row_align
    tb = min(max(row_align, (block_b // row_align) * row_align), tb_cap, b_pad)
    if multi_tc and b_pad >= 2 * row_align:
        # >=2 grid steps so the "parallel" batch axis shards across both TensorCores.
        tb = min(tb, pl.cdiv(pl.cdiv(b_pad, 2), row_align) * row_align)
    b_pad = pl.cdiv(b_pad, tb) * tb
    nb = b_pad // tb
    tbf = tb // F                                            # folded rows per tile

    def prep(x):
        x = x.astype(cdt)                                    # bf16 inputs on bf16 path
        if b_pad != B:
            x = jnp.pad(x, ((0, b_pad - B), (0, 0)))
        return x.reshape(b_pad // F, F * H)                  # free C-order fold
    x1f = prep(x1)
    x2f = prep(x2)

    # Advisory cost estimate (counts the F-fold block-diagonal MXU work).
    flops = 2 * b_pad * F * (2 * H * K + 3 * K ** 3 + 2 * K * K + K * H)
    bytes_accessed = weight_bytes + 2 * b_pad * H * act_sz + b_pad * H * out_sz
    cost = pl.CostEstimate(flops=flops, transcendentals=0,
                           bytes_accessed=bytes_accessed)

    # Raise the scoped VMEM limit only if the tile actually needs it.
    vmem_est = 2 * weight_bytes + tb * per_row
    cp_kwargs = {"dimension_semantics": ("parallel",)}
    if vmem_est > 14 * 1024 * 1024:
        cp_kwargs["vmem_limit_bytes"] = int(min(vmem_est + (8 << 20), vmem_phys_cap))
    compiler_params = pltpu.CompilerParams(**cp_kwargs)

    grid_spec = pltpu.PrefetchScalarGridSpec(
        num_scalar_prefetch=0,
        grid=(nb,),
        in_specs=[
            pl.BlockSpec((tbf, F * H), lambda b: (b, 0)),          # x1 (folded)
            pl.BlockSpec((tbf, F * H), lambda b: (b, 0)),          # x2 (folded)
            pl.BlockSpec((F * H, F * K), lambda b: (0, 0)),        # w1t
            pl.BlockSpec((1, F * K), lambda b: (0, 0)),            # b1
            pl.BlockSpec((F * K, F * K * K), lambda b: (0, 0)),    # rm
            pl.BlockSpec((F * K, F * K * K), lambda b: (0, 0)),    # tm
            pl.BlockSpec((F * K * K, F * K), lambda b: (0, 0)),    # wbil
            pl.BlockSpec((F * K, F * K), lambda b: (0, 0)),        # wb1
            pl.BlockSpec((F * K, F * K), lambda b: (0, 0)),        # wb2
            pl.BlockSpec((1, F * K), lambda b: (0, 0)),            # bvec
            pl.BlockSpec((F * K, F * H), lambda b: (0, 0)),        # w2t
            pl.BlockSpec((1, F * H), lambda b: (0, 0)),            # b2
        ],
        out_specs=pl.BlockSpec((tbf, F * H), lambda b: (b, 0)),    # lane-dense out
    )

    out = pl.pallas_call(
        tensor_network_kernel,
        out_shape=jax.ShapeDtypeStruct((b_pad // F, F * H), out_dtype),
        grid_spec=grid_spec,
        compiler_params=compiler_params,
        cost_estimate=cost,
    )(x1f, x2f, *weight_args)

    out = out.reshape(b_pad, H)[:B]                          # free unfold + strip pad
    return out[:, None, :]                                   # (B, 1, H), like torch


# ---------------------------------------------------------------------------
# Pure-JAX reference mirroring the PyTorch forward exactly
# ---------------------------------------------------------------------------
def tensor_network_reference(embedding_1, embedding_2, params):
    e1 = jnp.squeeze(embedding_1, axis=1) @ params["fc1_w"].T + params["fc1_b"]
    e2 = jnp.squeeze(embedding_2, axis=1) @ params["fc1_w"].T + params["fc1_b"]
    W = params["weight_matrix"]
    scoring = jnp.einsum("bi,ijd,bj->bd", e1, W, e2)
    combined = jnp.concatenate([e1, e2], axis=1)
    block_scoring = (params["weight_matrix_block"] @ combined.T).T
    scores = jax.nn.relu(scoring + block_scoring + params["bias"].reshape(-1))
    scores = scores[:, None, :]
    return scores @ params["fc2_w"].T + params["fc2_b"]


if __name__ == "__main__":
    B, hid_dim, k_feature, k_dim = 2, 32, 16, 16

    key = jax.random.PRNGKey(0)
    k_params, k_e1, k_e2 = jax.random.split(key, 3)
    params = init_params(k_params, k_feature, hid_dim, k_dim)

    embedding_1 = jax.random.normal(k_e1, (B, 1, hid_dim), jnp.float32)
    embedding_2 = jax.random.normal(k_e2, (B, 1, hid_dim), jnp.float32)

    ref = tensor_network_reference(embedding_1, embedding_2, params)

    fwd = jax.jit(tensor_network_forward)

    # f32 MXU path (tight tolerance vs. reference)
    prepared_f32 = prepare_params(params, jnp.float32)
    out = jax.block_until_ready(fwd(embedding_1, embedding_2, prepared_f32))
    assert out.shape == (B, 1, hid_dim)
    assert jnp.allclose(out, ref, atol=1e-4, rtol=1e-4), "f32 kernel mismatch vs reference"

    # bf16-operand / f32-accumulate path (fast on v5e/v6e/v7x; looser numerics)
    prepared_bf16 = prepare_params(params, jnp.bfloat16)
    out_bf16 = jax.block_until_ready(fwd(embedding_1, embedding_2, prepared_bf16))
    assert out_bf16.shape == (B, 1, hid_dim)
    assert jnp.allclose(out_bf16, ref, atol=2e-1, rtol=1e-1), "bf16 kernel mismatch vs reference"

    # Larger, non-aligned batch: exercises padding, lane-dense folding and a
    # multi-step "parallel" grid (block_b lowered so nb > 1 even on one core).
    B2 = 600
    kb1, kb2 = jax.random.split(jax.random.PRNGKey(1))
    e1_big = jax.random.normal(kb1, (B2, 1, hid_dim), jnp.float32)
    e2_big = jax.random.normal(kb2, (B2, 1, hid_dim), jnp.float32)
    ref_big = tensor_network_reference(e1_big, e2_big, params)
    fwd_big = jax.jit(lambda a, b, p: tensor_network_forward(a, b, p, block_b=256))
    out_big = jax.block_until_ready(fwd_big(e1_big, e2_big, prepared_f32))
    assert out_big.shape == (B2, 1, hid_dim)
    assert jnp.allclose(out_big, ref_big, atol=1e-4, rtol=1e-4), "tiled kernel mismatch"

    print("KERNEL_OK")
</pallas_src>

<mosaic_0001>
module attributes {stable_mosaic.version = 11 : i64} {
  func.func @tensor_network_kernel(%arg0: i32, %arg1: memref<8x128xf32, #tpu.memory_space<vmem>>, %arg2: memref<8x128xf32, #tpu.memory_space<vmem>>, %arg3: memref<128x64xf32, #tpu.memory_space<vmem>>, %arg4: memref<1x64xf32, #tpu.memory_space<vmem>>, %arg5: memref<64x1024xf32, #tpu.memory_space<vmem>>, %arg6: memref<64x1024xf32, #tpu.memory_space<vmem>>, %arg7: memref<1024x64xf32, #tpu.memory_space<vmem>>, %arg8: memref<64x64xf32, #tpu.memory_space<vmem>>, %arg9: memref<64x64xf32, #tpu.memory_space<vmem>>, %arg10: memref<1x64xf32, #tpu.memory_space<vmem>>, %arg11: memref<64x128xf32, #tpu.memory_space<vmem>>, %arg12: memref<1x128xf32, #tpu.memory_space<vmem>>, %arg13: memref<8x128xf32, #tpu.memory_space<vmem>>) attributes {dimension_semantics = [#tpu.dimension_semantics<parallel>], iteration_bounds = array<i64: 1>, scalar_prefetch = 0 : i64, scratch_operands = 0 : i64, tpu.core_type = #tpu.core_type<tc>, window_params = [{transform_indices = @transform_0, window_bounds = array<i64: 8, 128>}, {transform_indices = @transform_1, window_bounds = array<i64: 8, 128>}, {pipeline_mode = #tpu.pipeline_mode<synchronous>, transform_indices = @transform_2, window_bounds = array<i64: 128, 64>}, {pipeline_mode = #tpu.pipeline_mode<synchronous>, transform_indices = @transform_3, window_bounds = array<i64: 1, 64>}, {pipeline_mode = #tpu.pipeline_mode<synchronous>, transform_indices = @transform_4, window_bounds = array<i64: 64, 1024>}, {pipeline_mode = #tpu.pipeline_mode<synchronous>, transform_indices = @transform_5, window_bounds = array<i64: 64, 1024>}, {pipeline_mode = #tpu.pipeline_mode<synchronous>, transform_indices = @transform_6, window_bounds = array<i64: 1024, 64>}, {pipeline_mode = #tpu.pipeline_mode<synchronous>, transform_indices = @transform_7, window_bounds = array<i64: 64, 64>}, {pipeline_mode = #tpu.pipeline_mode<synchronous>, transform_indices = @transform_8, window_bounds = array<i64: 64, 64>}, {pipeline_mode = #tpu.pipeline_mode<synchronous>, transform_indices = @transform_9, window_bounds = array<i64: 1, 64>}, {pipeline_mode = #tpu.pipeline_mode<synchronous>, transform_indices = @transform_10, window_bounds = array<i64: 64, 128>}, {pipeline_mode = #tpu.pipeline_mode<synchronous>, transform_indices = @transform_11, window_bounds = array<i64: 1, 128>}, {transform_indices = @transform_12, window_bounds = array<i64: 8, 128>}]} {
    %c0 = arith.constant 0 : index
    %c0_0 = arith.constant 0 : index
    %0 = vector.load %arg1[%c0, %c0_0] : memref<8x128xf32, #tpu.memory_space<vmem>>, vector<8x128xf32>
    %c0_1 = arith.constant 0 : index
    %c0_2 = arith.constant 0 : index
    %1 = vector.load %arg3[%c0_1, %c0_2] : memref<128x64xf32, #tpu.memory_space<vmem>>, vector<128x64xf32>
    %cst = arith.constant dense<0.000000e+00> : vector<8x64xf32>
    %2 = tpu.matmul %0, %1, %cst {dimension_numbers = #tpu.dot_dimension_numbers<[1], [0], [0], [1], [0, 0, 1, 1], [], []>} : vector<8x128xf32>, vector<128x64xf32>, vector<8x64xf32> -> vector<8x64xf32>
    %c0_3 = arith.constant 0 : index
    %c0_4 = arith.constant 0 : index
    %3 = vector.load %arg4[%c0_3, %c0_4] : memref<1x64xf32, #tpu.memory_space<vmem>>, vector<1x64xf32>
    %4 = vector.broadcast %3 : vector<1x64xf32> to vector<8x64xf32>
    %5 = arith.addf %2, %4 : vector<8x64xf32>
    %c0_5 = arith.constant 0 : index
    %c0_6 = arith.constant 0 : index
    %6 = vector.load %arg2[%c0_5, %c0_6] : memref<8x128xf32, #tpu.memory_space<vmem>>, vector<8x128xf32>
    %c0_7 = arith.constant 0 : index
    %c0_8 = arith.constant 0 : index
    %7 = vector.load %arg3[%c0_7, %c0_8] : memref<128x64xf32, #tpu.memory_space<vmem>>, vector<128x64xf32>
    %cst_9 = arith.constant dense<0.000000e+00> : vector<8x64xf32>
    %8 = tpu.matmul %6, %7, %cst_9 {dimension_numbers = #tpu.dot_dimension_numbers<[1], [0], [0], [1], [0, 0, 1, 1], [], []>} : vector<8x128xf32>, vector<128x64xf32>, vector<8x64xf32> -> vector<8x64xf32>
    %c0_10 = arith.constant 0 : index
    %c0_11 = arith.constant 0 : index
    %9 = vector.load %arg4[%c0_10, %c0_11] : memref<1x64xf32, #tpu.memory_space<vmem>>, vector<1x64xf32>
    %10 = vector.broadcast %9 : vector<1x64xf32> to vector<8x64xf32>
    %11 = arith.addf %8, %10 : vector<8x64xf32>
    %c0_12 = arith.constant 0 : index
    %c0_13 = arith.constant 0 : index
    %12 = vector.load %arg5[%c0_12, %c0_13] : memref<64x1024xf32, #tpu.memory_space<vmem>>, vector<64x1024xf32>
    %cst_14 = arith.constant dense<0.000000e+00> : vector<8x1024xf32>
    %13 = tpu.matmul %5, %12, %cst_14 {dimension_numbers = #tpu.dot_dimension_numbers<[1], [0], [0], [1], [0, 0, 1, 1], [], []>} : vector<8x64xf32>, vector<64x1024xf32>, vector<8x1024xf32> -> vector<8x1024xf32>
    %c0_15 = arith.constant 0 : index
    %c0_16 = arith.constant 0 : index
    %14 = vector.load %arg6[%c0_15, %c0_16] : memref<64x1024xf32, #tpu.memory_space<vmem>>, vector<64x1024xf32>
    %cst_17 = arith.constant dense<0.000000e+00> : vector<8x1024xf32>
    %15 = tpu.matmul %11, %14, %cst_17 {dimension_numbers = #tpu.dot_dimension_numbers<[1], [0], [0], [1], [0, 0, 1, 1], [], []>} : vector<8x64xf32>, vector<64x1024xf32>, vector<8x1024xf32> -> vector<8x1024xf32>
    %16 = arith.mulf %13, %15 : vector<8x1024xf32>
    %c0_18 = arith.constant 0 : index
    %c0_19 = arith.constant 0 : index
    %17 = vector.load %arg7[%c0_18, %c0_19] : memref<1024x64xf32, #tpu.memory_space<vmem>>, vector<1024x64xf32>
    %cst_20 = arith.constant dense<0.000000e+00> : vector<8x64xf32>
    %18 = tpu.matmul %16, %17, %cst_20 {dimension_numbers = #tpu.dot_dimension_numbers<[1], [0], [0], [1], [0, 0, 1, 1], [], []>} : vector<8x1024xf32>, vector<1024x64xf32>, vector<8x64xf32> -> vector<8x64xf32>
    %c0_21 = arith.constant 0 : index
    %c0_22 = arith.constant 0 : index
    %19 = vector.load %arg8[%c0_21, %c0_22] : memref<64x64xf32, #tpu.memory_space<vmem>>, vector<64x64xf32>
    %cst_23 = arith.constant dense<0.000000e+00> : vector<8x64xf32>
    %20 = tpu.matmul %5, %19, %cst_23 {dimension_numbers = #tpu.dot_dimension_numbers<[1], [0], [0], [1], [0, 0, 1, 1], [], []>} : vector<8x64xf32>, vector<64x64xf32>, vector<8x64xf32> -> vector<8x64xf32>
    %c0_24 = arith.constant 0 : index
    %c0_25 = arith.constant 0 : index
    %21 = vector.load %arg9[%c0_24, %c0_25] : memref<64x64xf32, #tpu.memory_space<vmem>>, vector<64x64xf32>
    %cst_26 = arith.constant dense<0.000000e+00> : vector<8x64xf32>
    %22 = tpu.matmul %11, %21, %cst_26 {dimension_numbers = #tpu.dot_dimension_numbers<[1], [0], [0], [1], [0, 0, 1, 1], [], []>} : vector<8x64xf32>, vector<64x64xf32>, vector<8x64xf32> -> vector<8x64xf32>
    %23 = arith.addf %20, %22 : vector<8x64xf32>
    %24 = arith.addf %18, %23 : vector<8x64xf32>
    %c0_27 = arith.constant 0 : index
    %c0_28 = arith.constant 0 : index
    %25 = vector.load %arg10[%c0_27, %c0_28] : memref<1x64xf32, #tpu.memory_space<vmem>>, vector<1x64xf32>
    %26 = vector.broadcast %25 : vector<1x64xf32> to vector<8x64xf32>
    %27 = arith.addf %24, %26 : vector<8x64xf32>
    %cst_29 = arith.constant 0.000000e+00 : f32
    %28 = vector.broadcast %cst_29 : f32 to vector<8x64xf32>
    %29 = arith.maximumf %27, %28 : vector<8x64xf32>
    %c0_30 = arith.constant 0 : index
    %c0_31 = arith.constant 0 : index
    %30 = vector.load %arg11[%c0_30, %c0_31] : memref<64x128xf32, #tpu.memory_space<vmem>>, vector<64x128xf32>
    %cst_32 = arith.constant dense<0.000000e+00> : vector<8x128xf32>
    %31 = tpu.matmul %29, %30, %cst_32 {dimension_numbers = #tpu.dot_dimension_numbers<[1], [0], [0], [1], [0, 0, 1, 1], [], []>} : vector<8x64xf32>, vector<64x128xf32>, vector<8x128xf32> -> vector<8x128xf32>
    %c0_33 = arith.constant 0 : index
    %c0_34 = arith.constant 0 : index
    %32 = vector.load %arg12[%c0_33, %c0_34] : memref<1x128xf32, #tpu.memory_space<vmem>>, vector<1x128xf32>
    %33 = vector.broadcast %32 : vector<1x128xf32> to vector<8x128xf32>
    %34 = arith.addf %31, %33 : vector<8x128xf32>
    %c0_35 = arith.constant 0 : index
    %c0_36 = arith.constant 0 : index
    %35 = vector.load %arg13[%c0_35, %c0_36] : memref<8x128xf32, #tpu.memory_space<vmem>>, vector<8x128xf32>
    tpu.vector_store %arg13[%c0_35, %c0_36], %34 {strides = array<i32>} : memref<8x128xf32, #tpu.memory_space<vmem>>, vector<8x128xf32>,
    return
  }
  func.func @transform_0(%arg0: i32) -> (i32, i32) {
    %c0_i32 = arith.constant 0 : i32
    %c0_i32_0 = arith.constant 0 : i32
    return %arg0, %c0_i32 : i32, i32
  }
  func.func @transform_1(%arg0: i32) -> (i32, i32) {
    %c0_i32 = arith.constant 0 : i32
    %c0_i32_0 = arith.constant 0 : i32
    return %arg0, %c0_i32 : i32, i32
  }
  func.func @transform_2(%arg0: i32) -> (i32, i32) {
    %c0_i32 = arith.constant 0 : i32
    %c0_i32_0 = arith.constant 0 : i32
    %c0_i32_1 = arith.constant 0 : i32
    return %c0_i32, %c0_i32_0 : i32, i32
  }
  func.func @transform_3(%arg0: i32) -> (i32, i32) {
    %c0_i32 = arith.constant 0 : i32
    %c0_i32_0 = arith.constant 0 : i32
    %c0_i32_1 = arith.constant 0 : i32
    return %c0_i32, %c0_i32_0 : i32, i32
  }
  func.func @transform_4(%arg0: i32) -> (i32, i32) {
    %c0_i32 = arith.constant 0 : i32
    %c0_i32_0 = arith.constant 0 : i32
    %c0_i32_1 = arith.constant 0 : i32
    return %c0_i32, %c0_i32_0 : i32, i32
  }
  func.func @transform_5(%arg0: i32) -> (i32, i32) {
    %c0_i32 = arith.constant 0 : i32
    %c0_i32_0 = arith.constant 0 : i32
    %c0_i32_1 = arith.constant 0 : i32
    return %c0_i32, %c0_i32_0 : i32, i32
  }
  func.func @transform_6(%arg0: i32) -> (i32, i32) {
    %c0_i32 = arith.constant 0 : i32
    %c0_i32_0 = arith.constant 0 : i32
    %c0_i32_1 = arith.constant 0 : i32
    return %c0_i32, %c0_i32_0 : i32, i32
  }
  func.func @transform_7(%arg0: i32) -> (i32, i32) {
    %c0_i32 = arith.constant 0 : i32
    %c0_i32_0 = arith.constant 0 : i32
    %c0_i32_1 = arith.constant 0 : i32
    return %c0_i32, %c0_i32_0 : i32, i32
  }
  func.func @transform_8(%arg0: i32) -> (i32, i32) {
    %c0_i32 = arith.constant 0 : i32
    %c0_i32_0 = arith.constant 0 : i32
    %c0_i32_1 = arith.constant 0 : i32
    return %c0_i32, %c0_i32_0 : i32, i32
  }
  func.func @transform_9(%arg0: i32) -> (i32, i32) {
    %c0_i32 = arith.constant 0 : i32
    %c0_i32_0 = arith.constant 0 : i32
    %c0_i32_1 = arith.constant 0 : i32
    return %c0_i32, %c0_i32_0 : i32, i32
  }
  func.func @transform_10(%arg0: i32) -> (i32, i32) {
    %c0_i32 = arith.constant 0 : i32
    %c0_i32_0 = arith.constant 0 : i32
    %c0_i32_1 = arith.constant 0 : i32
    return %c0_i32, %c0_i32_0 : i32, i32
  }
  func.func @transform_11(%arg0: i32) -> (i32, i32) {
    %c0_i32 = arith.constant 0 : i32
    %c0_i32_0 = arith.constant 0 : i32
    %c0_i32_1 = arith.constant 0 : i32
    return %c0_i32, %c0_i32_0 : i32, i32
  }
  func.func @transform_12(%arg0: i32) -> (i32, i32) {
    %c0_i32 = arith.constant 0 : i32
    %c0_i32_0 = arith.constant 0 : i32
    return %arg0, %c0_i32 : i32, i32
  }
}

</mosaic_0001>

<bundles_post_ra>
// kernel: tensor_network_forward.1
= control target key start
LH: loop header
LB: loop body
LE: loop exit
PB: predicated region body
PF: predicated region fallthrough
CT: control target
= control target key end

     0   :  { %v2268_v0 = vmov 0.0|0.0   ;;  %vm2269_vm0 = vmmov 0   ;;  %v2270_v6 = vmov 0.0   ;;  %vm270_vm1 = vcmask 523264   ;;  %s3338_s2 = inlined_call_operand.vmem [shape: f32[128,64], index: 2, kind: input, shape index: {}]   ;;  %s3339_s4 = inlined_call_operand.vmem [shape: f32[64,1024], index: 4, kind: input, shape index: {}]   ;;  %s3340_s0 = inlined_call_operand.vmem [shape: f32[8,128], index: 0, kind: input, shape index: {}]   ;;  %s3341_s1 = inlined_call_operand.vmem [shape: f32[8,128], index: 1, kind: input, shape index: {}]   ;;  %s3342_s3 = inlined_call_operand.vmem [shape: f32[1,64], index: 3, kind: input, shape index: {}]   ;;  %s3343_s5 = inlined_call_operand.vmem [shape: f32[64,1024], index: 5, kind: input, shape index: {}]   ;;  %s3344_s8 = inlined_call_operand.vmem [shape: f32[64,64], index: 8, kind: input, shape index: {}]   ;;  %s3345_s7 = inlined_call_operand.vmem [shape: f32[64,64], index: 7, kind: input, shape index: {}]   ;;  %s3346_s6 = inlined_call_operand.vmem [shape: f32[1024,64], index: 6, kind: input, shape index: {}]   ;;  %s3347_s10 = inlined_call_operand.vmem [shape: f32[64,128], index: 10, kind: input, shape index: {}]   ;;  %s3348_s9 = inlined_call_operand.vmem [shape: f32[1,64], index: 9, kind: input, shape index: {}]   ;;  %s3349_s11 = inlined_call_operand.vmem [shape: f32[1,128], index: 11, kind: input, shape index: {}]   ;;  %s3350_s12 = inlined_call_operand.vmem [shape: f32[8,128], index: 12, kind: output, shape index: {}]  }
   0x1   :  { %1925 = vmatprep.subr.bf16.mxu0 %v2268_v0  ;;  %v42_v1 = vld [vmem:[%s3338_s2] sm:$0xff]  ;;  %v43_v2 = vld [vmem:[%s3338_s2 + $0x8] sm:$0xff]  ;;  %v44_v3 = vld [vmem:[%s3338_s2 + $0x10] sm:$0xff]  ;;  %1949 = vmatprep.subr.bf16.mxu1 %v2268_v0 }
   0x2   :  { %v1926_v4 = vpack.c.bf16 %v43_v2, %v42_v1  ;;  %v45_v5 = vld [vmem:[%s3338_s2 + $0x18] sm:$0xff]  ;;  %1830 = vmatprep.mubr.msk.f32.mxu0 %vm2269_vm0, %v2270_v6  ;;  %1865 = vmatprep.mubr.msk.f32.mxu1 %vm2269_vm0, %v2270_v6  ;;  %v46_v8 = vld [vmem:[%s3338_s2 + $0x20] sm:$0xff]  ;;  %v47_v9 = vld [vmem:[%s3338_s2 + $0x28] sm:$0xff] }
   0x3   :  { %v1929_v7 = vpack.c.bf16 %v45_v5, %v44_v3  ;;  %v1932_v10 = vpack.c.bf16 %v47_v9, %v46_v8  ;;  %v48_v11 = vld [vmem:[%s3338_s2 + $0x30] sm:$0xff]  ;;  %v49_v12 = vld [vmem:[%s3338_s2 + $0x38] sm:$0xff]  ;;  %v50_v14 = vld [vmem:[%s3338_s2 + $0x40] sm:$0xff] }
   0x4   :  { %1927 = vmatpush3.bf16.msra.mxu0 %v1926_v4  ;;  %1951 = vmatpush3.bf16.msra.mxu1 %v1926_v4  ;;  %v1935_v13 = vpack.c.bf16 %v49_v12, %v48_v11  ;;  %v51_v15 = vld [vmem:[%s3338_s2 + $0x48] sm:$0xff]  ;;  %v52_v17 = vld [vmem:[%s3338_s2 + $0x50] sm:$0xff]  ;;  %v53_v18 = vld [vmem:[%s3338_s2 + $0x58] sm:$0xff] }
   0x5   :  { %1928 = vmatprep.subr.bf16.mxu0 %v2268_v0  ;;  %1952 = vmatprep.subr.bf16.mxu1 %v2268_v0  ;;  %v1938_v16 = vpack.c.bf16 %v51_v15, %v50_v14  ;;  %v1941_v19 = vpack.c.bf16 %v53_v18, %v52_v17  ;;  %v54_v20 = vld [vmem:[%s3338_s2 + $0x60] sm:$0xff]  ;;  %v55_v21 = vld [vmem:[%s3338_s2 + $0x68] sm:$0xff]  ;;  %v56_v23 = vld [vmem:[%s3338_s2 + $0x70] sm:$0xff] }
   0x6   :  { %v1944_v22 = vpack.c.bf16 %v55_v21, %v54_v20  ;;  %v57_v24 = vld [vmem:[%s3338_s2 + $0x78] sm:$0xff]  ;;  %v207_v25 = vld [vmem:[%s3339_s4 + $0x8] sm:$0xff]  ;;  %v206_v30 = vld [vmem:[%s3339_s4] sm:$0xff] }
   0x7   :  { %v215_v26 = vld [vmem:[%s3339_s4 + $0x48] sm:$0xff]  ;;  %v209_v27 = vld [vmem:[%s3339_s4 + $0x18] sm:$0xff]  ;;  %v1947_v29 = vpack.c.bf16 %v57_v24, %v56_v23  ;;  %v214_v31 = vld [vmem:[%s3339_s4 + $0x40] sm:$0xff] }
   0x8   :  { %1930 = vmatpush3.bf16.msra.mxu0 %v1929_v7  ;;  %1954 = vmatpush3.bf16.msra.mxu1 %v1929_v7  ;;  %v217_v28 = vld [vmem:[%s3339_s4 + $0x58] sm:$0xff]  ;;  %v1973_v32 = vpack.c.bf16 %v215_v26, %v207_v25  ;;  %v208_v34 = vld [vmem:[%s3339_s4 + $0x10] sm:$0xff]  ;;  %v223_v36 = vld [vmem:[%s3339_s4 + $0x88] sm:$0xff]  ;;  %v1975_v42 = vpack.c.bf16 %v214_v31, %v206_v30 }
   0x9   :  { %1931 = vmatprep.subr.bf16.mxu0 %v2268_v0  ;;  %1955 = vmatprep.subr.bf16.mxu1 %v2268_v0  ;;  %v1989_v33 = vpack.c.bf16 %v217_v28, %v209_v27  ;;  %v216_v35 = vld [vmem:[%s3339_s4 + $0x50] sm:$0xff]  ;;  %v231_v37 = vld [vmem:[%s3339_s4 + $0xc8] sm:$0xff]  ;;  %v225_v38 = vld [vmem:[%s3339_s4 + $0x98] sm:$0xff] }
   0xa   :  { %v233_v39 = vld [vmem:[%s3339_s4 + $0xd8] sm:$0xff]  ;;  %v41_v40 = vld [vmem:[%s3340_s0] sm:$0xff]  ;;  %v1991_v43 = vpack.c.bf16 %v216_v35, %v208_v34  ;;  %v1977_v46 = vpack.c.bf16 %v231_v37, %v223_v36  ;;  %v224_v48 = vld [vmem:[%s3339_s4 + $0x90] sm:$0xff] }
   0xb   :  { %v135_v41 = vld [vmem:[%s3341_s1] sm:$0xff]  ;;  %v1993_v47 = vpack.c.bf16 %v233_v39, %v225_v38  ;;  %v232_v49 = vld [vmem:[%s3339_s4 + $0xd0] sm:$0xff]  ;;  %v239_v50 = vld [vmem:[%s3339_s4 + $0x108] sm:$0xff] }
   0xc   :  { %1933 = vmatpush3.bf16.msra.mxu0 %v1932_v10  ;;  %1957 = vmatpush3.bf16.msra.mxu1 %v1932_v10  ;;  %v222_v44 = vld [vmem:[%s3339_s4 + $0x80] sm:$0xff]  ;;  %v247_v51 = vld [vmem:[%s3339_s4 + $0x148] sm:$0xff]  ;;  %v241_v52 = vld [vmem:[%s3339_s4 + $0x118] sm:$0xff]  ;;  %v1995_v55 = vpack.c.bf16 %v232_v49, %v224_v48 }
   0xd   :  { %1934 = vmatprep.subr.bf16.mxu0 %v2268_v0  ;;  %1958 = vmatprep.subr.bf16.mxu1 %v2268_v0  ;;  %v230_v45 = vld [vmem:[%s3339_s4 + $0xc0] sm:$0xff]  ;;  %v249_v53 = vld [vmem:[%s3339_s4 + $0x158] sm:$0xff]  ;;  %v1981_v58 = vpack.c.bf16 %v247_v51, %v239_v50  ;;  %v240_v60 = vld [vmem:[%s3339_s4 + $0x110] sm:$0xff] }
   0xe   :  { %v1979_v54 = vpack.c.bf16 %v230_v45, %v222_v44  ;;  %v238_v56 = vld [vmem:[%s3339_s4 + $0x100] sm:$0xff]  ;;  %v1997_v59 = vpack.c.bf16 %v249_v53, %v241_v52  ;;  %v248_v61 = vld [vmem:[%s3339_s4 + $0x150] sm:$0xff]  ;;  %v255_v62 = vld [vmem:[%s3339_s4 + $0x188] sm:$0xff] }
   0xf   :  { %v246_v57 = vld [vmem:[%s3339_s4 + $0x140] sm:$0xff]  ;;  %v263_v63 = vld [vmem:[%s3339_s4 + $0x1c8] sm:$0xff]  ;;  %v257_v1 = vld [vmem:[%s3339_s4 + $0x198] sm:$0xff]  ;;  %v1999_v4 = vpack.c.bf16 %v248_v61, %v240_v60 }
  0x10   :  { %1936 = vmatpush3.bf16.msra.mxu0 %v1935_v13  ;;  %1960 = vmatpush3.bf16.msra.mxu1 %v1935_v13  ;;  %v265_v2 = vld [vmem:[%s3339_s4 + $0x1d8] sm:$0xff]  ;;  %v1983_v3 = vpack.c.bf16 %v246_v57, %v238_v56  ;;  %v254_v5 = vld [vmem:[%s3339_s4 + $0x180] sm:$0xff]  ;;  %v1985_v7 = vpack.c.bf16 %v263_v63, %v255_v62  ;;  %v256_v10 = vld [vmem:[%s3339_s4 + $0x190] sm:$0xff] }
  0x11   :  { %1937 = vmatprep.subr.bf16.mxu0 %v2268_v0  ;;  %1961 = vmatprep.subr.bf16.mxu1 %v2268_v0  ;;  %v2001_v8 = vpack.c.bf16 %v265_v2, %v257_v1  ;;  %v262_v9 = vld [vmem:[%s3339_s4 + $0x1c0] sm:$0xff]  ;;  %v264_v11 = vld [vmem:[%s3339_s4 + $0x1d0] sm:$0xff]  ;;  %v211_v14 = vld [vmem:[%s3339_s4 + $0x28] sm:$0xff] }
  0x12   :  { %v1987_v12 = vpack.c.bf16 %v262_v9, %v254_v5  ;;  %v2003_v13 = vpack.c.bf16 %v264_v11, %v256_v10  ;;  %v219_v15 = vld [vmem:[%s3339_s4 + $0x68] sm:$0xff]  ;;  %v221_v18 = vld [vmem:[%s3339_s4 + $0x78] sm:$0xff]  ;;  %v2523_v20 = vld [vmem:[%s3342_s3] ss:$0 sm:$0xff] }
  0x13   :  { %v2005_v17 = vpack.c.bf16 %v219_v15, %v211_v14  ;;  %v210_v21 = vld [vmem:[%s3339_s4 + $0x20] sm:$0xff]  ;;  %v212_v23 = vld [vmem:[%s3339_s4 + $0x30] sm:$0xff]  ;;  %v227_v25 = vld [vmem:[%s3339_s4 + $0xa8] sm:$0xff] }
  0x14   :  { %1939 = vmatpush3.bf16.msra.mxu0 %v1938_v16  ;;  %1963 = vmatpush3.bf16.msra.mxu1 %v1938_v16  ;;  %v213_v16 = vld [vmem:[%s3339_s4 + $0x38] sm:$0xff]  ;;  %v220_v24 = vld [vmem:[%s3339_s4 + $0x70] sm:$0xff]  ;;  %v235_v26 = vld [vmem:[%s3339_s4 + $0xe8] sm:$0xff] }
  0x15   :  { %1940 = vmatprep.subr.bf16.mxu0 %v2268_v0  ;;  %1964 = vmatprep.subr.bf16.mxu1 %v2268_v0  ;;  %v229_v27 = vld [vmem:[%s3339_s4 + $0xb8] sm:$0xff]  ;;  %v2023_v31 = vpack.c.bf16 %v220_v24, %v212_v23  ;;  %v2009_v37 = vpack.c.bf16 %v235_v26, %v227_v25  ;;  %v228_v39 = vld [vmem:[%s3339_s4 + $0xb0] sm:$0xff]  ;;  %v242_v48 = vld [vmem:[%s3339_s4 + $0x120] sm:$0xff] }
  0x16   :  { %v237_v28 = vld [vmem:[%s3339_s4 + $0xf8] sm:$0xff]  ;;  %v250_v49 = vld [vmem:[%s3339_s4 + $0x160] sm:$0xff]  ;;  %v244_v52 = vld [vmem:[%s3339_s4 + $0x130] sm:$0xff] }
  0x17   :  { %v2025_v38 = vpack.c.bf16 %v237_v28, %v229_v27  ;;  %v245_v44 = vld [vmem:[%s3339_s4 + $0x138] sm:$0xff]  ;;  %v252_v53 = vld [vmem:[%s3339_s4 + $0x170] sm:$0xff]  ;;  %v258_v60 = vld [vmem:[%s3339_s4 + $0x1a0] sm:$0xff] }
  0x18   :  { %1942 = vmatpush3.bf16.msra.mxu0 %v1941_v19  ;;  %1966 = vmatpush3.bf16.msra.mxu1 %v1941_v19  ;;  %v2021_v19 = vpack.c.bf16 %v221_v18, %v213_v16  ;;  %v253_v45 = vld [vmem:[%s3339_s4 + $0x178] sm:$0xff]  ;;  %v266_v61 = vld [vmem:[%s3339_s4 + $0x1e0] sm:$0xff]  ;;  %v260_v1 = vld [vmem:[%s3339_s4 + $0x1b0] sm:$0xff] }
  0x19   :  { %1943 = vmatprep.subr.bf16.mxu0 %v2268_v0  ;;  %1967 = vmatprep.subr.bf16.mxu1 %v2268_v0  ;;  %v2029_v51 = vpack.c.bf16 %v253_v45, %v245_v44  ;;  %v261_v56 = vld [vmem:[%s3339_s4 + $0x1b8] sm:$0xff]  ;;  %v268_v2 = vld [vmem:[%s3339_s4 + $0x1f0] sm:$0xff]  ;;  %v558_v10 = vld [vmem:[%s3343_s5] sm:$0xff] }
  0x1a   :  { %v269_v57 = vld [vmem:[%s3339_s4 + $0x1f8] sm:$0xff]  ;;  %v2035_v9 = vpack.c.bf16 %v268_v2, %v260_v1  ;;  %v566_v11 = vld [vmem:[%s3343_s5 + $0x40] sm:$0xff]  ;;  %v560_v14 = vld [vmem:[%s3343_s5 + $0x10] sm:$0xff] }
  0x1b   :  { %v2033_v63 = vpack.c.bf16 %v269_v57, %v261_v56  ;;  %v561_v5 = vld [vmem:[%s3343_s5 + $0x18] sm:$0xff]  ;;  %v568_v15 = vld [vmem:[%s3343_s5 + $0x50] sm:$0xff]  ;;  %v575_v16 = vld [vmem:[%s3343_s5 + $0x88] sm:$0xff] }
  0x1c   :  { %1945 = vmatpush3.bf16.msra.mxu0 %v1944_v22  ;;  %1969 = vmatpush3.bf16.msra.mxu1 %v1944_v22  ;;  %v218_v22 = vld [vmem:[%s3339_s4 + $0x60] sm:$0xff]  ;;  %v577_v18 = vld [vmem:[%s3343_s5 + $0x98] sm:$0xff]  ;;  %v576_v27 = vld [vmem:[%s3343_s5 + $0x90] sm:$0xff] }
  0x1d   :  { %1946 = vmatprep.subr.bf16.mxu0 %v2268_v0  ;;  %1970 = vmatprep.subr.bf16.mxu1 %v2268_v0  ;;  %v2007_v30 = vpack.c.bf16 %v218_v22, %v210_v21  ;;  %v2039_v21 = vpack.c.bf16 %v566_v11, %v558_v10  ;;  %v2055_v22 = vpack.c.bf16 %v568_v15, %v560_v14  ;;  %v574_v23 = vld [vmem:[%s3343_s5 + $0x80] sm:$0xff]  ;;  %v584_v28 = vld [vmem:[%s3343_s5 + $0xd0] sm:$0xff]  ;;  %v615_v44 = vld [vmem:[%s3343_s5 + $0x1c8] sm:$0xff] }
  0x1e   :  { %v582_v24 = vld [vmem:[%s3343_s5 + $0xc0] sm:$0xff]  ;;  %v609_v45 = vld [vmem:[%s3343_s5 + $0x198] sm:$0xff]  ;;  %v571_v56 = vld [vmem:[%s3343_s5 + $0x68] sm:$0xff] }
  0x1f   :  { %v565_v57 = vld [vmem:[%s3343_s5 + $0x38] sm:$0xff]  ;;  %v564_v2 = vld [vmem:[%s3343_s5 + $0x30] sm:$0xff] }
  0x20   :  { %1948 = vmatpush3.bf16.msra.mxu0 %v1947_v29  ;;  %1972 = vmatpush3.bf16.msra.mxu1 %v1947_v29 }
  0x21   :  { %1974 = vmatprep.subr.bf16.mxu0 %v1973_v32  ;;  %1990 = vmatprep.subr.bf16.mxu1 %v1989_v33  ;;  %v226_v32 = vld [vmem:[%s3339_s4 + $0xa0] sm:$0xff] }
  0x22   :  { %v234_v33 = vld [vmem:[%s3339_s4 + $0xe0] sm:$0xff] }
  0x23   :  { %1831 = vmatmul.mubr.f32.vlgmr.msra.gmra.mrb[0].mxu0 %v41_v40  ;;  %1866 = vmatmul.mubr.f32.vlgmr.msra.gmra.mrb[0].mxu1 %v135_v41  ;;  %v236_v40 = vld [vmem:[%s3339_s4 + $0xf0] sm:$0xff]  ;;  %v243_v41 = vld [vmem:[%s3339_s4 + $0x128] sm:$0xff] }
  0x24   :  { %1976 = vmatpush1.bf16.msra.mxu0 %v1975_v42  ;;  %1992 = vmatpush1.bf16.msra.mxu1 %v1991_v43  ;;  %v251_v43 = vld [vmem:[%s3339_s4 + $0x168] sm:$0xff] }
  0x25   :  { %1978 = vmatprep.subr.bf16.mxu0 %v1977_v46  ;;  %1994 = vmatprep.subr.bf16.mxu1 %v1993_v47  ;;  %v2011_v46 = vpack.c.bf16 %v234_v33, %v226_v32  ;;  %v2027_v47 = vpack.c.bf16 %v236_v40, %v228_v39  ;;  %v2013_v50 = vpack.c.bf16 %v251_v43, %v243_v41  ;;  %v601_v32 = vld [vmem:[%s3343_s5 + $0x158] sm:$0xff]  ;;  %v592_v41 = vld [vmem:[%s3343_s5 + $0x110] sm:$0xff]  ;;  %v607_v43 = vld [vmem:[%s3343_s5 + $0x188] sm:$0xff] }
  0x26   :  { %338 = vmatprep.mubr.f32.mxu0 %v2270_v6  ;;  %409 = vmatprep.mubr.f32.mxu1 %v2270_v6  ;;  %v2043_v33 = vpack.c.bf16 %v582_v24, %v574_v23  ;;  %v594_v23 = vld [vmem:[%s3343_s5 + $0x120] sm:$0xff] }
  0x27   :  { %v602_v24 = vld [vmem:[%s3343_s5 + $0x160] sm:$0xff] }
  0x28   :  { %1980 = vmatpush1.bf16.msra.mxu0 %v1979_v54  ;;  %1996 = vmatpush1.bf16.msra.mxu1 %v1995_v55  ;;  %v259_v54 = vld [vmem:[%s3339_s4 + $0x1a8] sm:$0xff] }
  0x29   :  { %1982 = vmatprep.subr.bf16.mxu0 %v1981_v58  ;;  %1998 = vmatprep.subr.bf16.mxu1 %v1997_v59  ;;  %v267_v55 = vld [vmem:[%s3339_s4 + $0x1e8] sm:$0xff]  ;;  %v2015_v58 = vpack.c.bf16 %v250_v49, %v242_v48  ;;  %v2031_v59 = vpack.c.bf16 %v252_v53, %v244_v52  ;;  %v606_v49 = vld [vmem:[%s3343_s5 + $0x180] sm:$0xff]  ;;  %v608_v53 = vld [vmem:[%s3343_s5 + $0x190] sm:$0xff] }
  0x2a   :  { %v2017_v62 = vpack.c.bf16 %v267_v55, %v259_v54  ;;  %v616_v54 = vld [vmem:[%s3343_s5 + $0x1d0] sm:$0xff]  ;;  %v563_v55 = vld [vmem:[%s3343_s5 + $0x28] sm:$0xff] }
  0x2c   :  { %1984 = vmatpush1.bf16.msra.mxu0 %v1983_v3  ;;  %2000 = vmatpush1.bf16.msra.mxu1 %v1999_v4  ;;  %v559_v3 = vld [vmem:[%s3343_s5 + $0x8] sm:$0xff] }
  0x2d   :  { %1986 = vmatprep.subr.bf16.mxu0 %v1985_v7  ;;  %2002 = vmatprep.subr.bf16.mxu1 %v2001_v8  ;;  %v567_v4 = vld [vmem:[%s3343_s5 + $0x48] sm:$0xff]  ;;  %v569_v7 = vld [vmem:[%s3343_s5 + $0x58] sm:$0xff]  ;;  %v2019_v8 = vpack.c.bf16 %v266_v61, %v258_v60  ;;  %v2067_v60 = vpack.c.bf16 %v616_v54, %v608_v53  ;;  %v562_v61 = vld [vmem:[%s3343_s5 + $0x20] sm:$0xff] }
  0x2e   :  { %v1047_v53 = vld [vmem:[%s3345_s7 + $0x10] sm:$0xff]  ;;  %v1048_v54 = vld [vmem:[%s3345_s7 + $0x18] sm:$0xff] }
  0x30   :  { %1988 = vmatpush1.bf16.msra.mxu0 %v1987_v12  ;;  %2004 = vmatpush1.bf16.msra.mxu1 %v2003_v13  ;;  %v2037_v12 = vpack.c.bf16 %v567_v4, %v559_v3  ;;  %v2053_v13 = vpack.c.bf16 %v569_v7, %v561_v5  ;;  %v572_v3 = vld [vmem:[%s3343_s5 + $0x70] sm:$0xff]  ;;  %v579_v4 = vld [vmem:[%s3343_s5 + $0xa8] sm:$0xff]  ;;  %v581_v7 = vld [vmem:[%s3343_s5 + $0xb8] sm:$0xff] }
  0x31   :  { %2006 = vmatprep.subr.bf16.mxu0 %v2005_v17  ;;  %2022 = vmatprep.subr.bf16.mxu1 %v2021_v19  ;;  %v583_v17 = vld [vmem:[%s3343_s5 + $0xc8] sm:$0xff]  ;;  %v585_v19 = vld [vmem:[%s3343_s5 + $0xd8] sm:$0xff]  ;;  %v2087_v11 = vpack.c.bf16 %v572_v3, %v564_v2  ;;  %v1051_v2 = vld [vmem:[%s3345_s7 + $0x30] sm:$0xff] }
  0x32   :  { %v2041_v25 = vpack.c.bf16 %v583_v17, %v575_v16  ;;  %v2057_v26 = vpack.c.bf16 %v585_v19, %v577_v18  ;;  %v587_v5 = vld [vmem:[%s3343_s5 + $0xe8] sm:$0xff]  ;;  %v597_v18 = vld [vmem:[%s3343_s5 + $0x138] sm:$0xff] }
  0x33   :  { %v2073_v14 = vpack.c.bf16 %v587_v5, %v579_v4  ;;  %v595_v16 = vld [vmem:[%s3343_s5 + $0x128] sm:$0xff]  ;;  %v605_v19 = vld [vmem:[%s3343_s5 + $0x178] sm:$0xff] }
  0x34   :  { %v603_v17 = vld [vmem:[%s3343_s5 + $0x168] sm:$0xff]  ;;  %v1052_v3 = vld [vmem:[%s3345_s7 + $0x38] sm:$0xff] }
  0x35   :  { %v2123_v5 = vpack.c.bf16 %v1052_v3, %v1051_v2  ;;  %v958_v2 = vld [vmem:[%s3346_s6 + $0x148] sm:$0xff]  ;;  %v943_v3 = vld [vmem:[%s3346_s6 + $0xd0] sm:$0xff] }
  0xf6   :  { %v131_v29 = vpop.f32.mrb[0].mxu0  ;;  %v2555_v34 = vpop.f32.mrb[0].mxu1 }
  0xf7   :  { %v2558_v35 = vadd.f32 %v2523_v20, %v131_v29  ;;  %v1832_v36 = vpop.f32.mrb[1].mxu0  ;;  %v1867_v42 = vpop.f32.mrb[1].mxu1  ;;  %v591_v29 = vld [vmem:[%s3343_s5 + $0x108] sm:$0xff] }
  0xf8   :  { %v2059_v36 = vpack.c.bf16 %v584_v28, %v576_v27  ;;  %v600_v42 = vld [vmem:[%s3343_s5 + $0x150] sm:$0xff] }
  0xf9   :  { %1584 = vmatmul.mubr.msk.f32.vlgmr.msra.gmra.mrb[2].mxu0 %vm270_vm1, %v2558_v35  ;;  %1585 = vmatmul.mubr.msk.f32.vlgmr.msra.gmra.mrb[2].mxu1 %vm270_vm1, %v2558_v35  ;;  %v2063_v48 = vpack.c.bf16 %v600_v42, %v592_v41  ;;  %v596_v27 = vld [vmem:[%s3343_s5 + $0x130] sm:$0xff] }
  0xfa   :  { %2008 = vmatpush1.bf16.msra.mxu0 %v2007_v30  ;;  %2024 = vmatpush1.bf16.msra.mxu1 %v2023_v31  ;;  %v599_v30 = vld [vmem:[%s3343_s5 + $0x148] sm:$0xff]  ;;  %v593_v31 = vld [vmem:[%s3343_s5 + $0x118] sm:$0xff]  ;;  %v604_v28 = vld [vmem:[%s3343_s5 + $0x170] sm:$0xff] }
  0xfb   :  { %2010 = vmatprep.subr.bf16.mxu0 %v2009_v37  ;;  %2026 = vmatprep.subr.bf16.mxu1 %v2025_v38  ;;  %v590_v37 = vld [vmem:[%s3343_s5 + $0x100] sm:$0xff]  ;;  %v2045_v39 = vpack.c.bf16 %v599_v30, %v591_v29  ;;  %v2061_v40 = vpack.c.bf16 %v601_v32, %v593_v31  ;;  %v611_v29 = vld [vmem:[%s3343_s5 + $0x1a8] sm:$0xff]  ;;  %v613_v31 = vld [vmem:[%s3343_s5 + $0x1b8] sm:$0xff] }
  0xfc   :  { %480 = vmatprep.mubr.f32.mxu0 %v2270_v6  ;;  %551 = vmatprep.mubr.f32.mxu1 %v2270_v6  ;;  %v598_v38 = vld [vmem:[%s3343_s5 + $0x140] sm:$0xff]  ;;  %v619_v30 = vld [vmem:[%s3343_s5 + $0x1e8] sm:$0xff]  ;;  %v621_v32 = vld [vmem:[%s3343_s5 + $0x1f8] sm:$0xff] }
  0xfd   :  { %v612_v41 = vld [vmem:[%s3343_s5 + $0x1b0] sm:$0xff] }
  0xfe   :  { %2012 = vmatpush1.bf16.msra.mxu0 %v2011_v46  ;;  %2028 = vmatpush1.bf16.msra.mxu1 %v2027_v47  ;;  %v617_v46 = vld [vmem:[%s3343_s5 + $0x1d8] sm:$0xff]  ;;  %v2047_v47 = vpack.c.bf16 %v598_v38, %v590_v37  ;;  %v610_v37 = vld [vmem:[%s3343_s5 + $0x1a0] sm:$0xff]  ;;  %v2081_v38 = vpack.c.bf16 %v619_v30, %v611_v29  ;;  %v620_v42 = vld [vmem:[%s3343_s5 + $0x1f0] sm:$0xff] }
  0xff   :  { %2014 = vmatprep.subr.bf16.mxu0 %v2013_v50  ;;  %2030 = vmatprep.subr.bf16.mxu1 %v2029_v51  ;;  %v614_v50 = vld [vmem:[%s3343_s5 + $0x1c0] sm:$0xff]  ;;  %v2049_v51 = vpack.c.bf16 %v615_v44, %v607_v43  ;;  %v2065_v52 = vpack.c.bf16 %v617_v46, %v609_v45  ;;  %v2099_v44 = vpack.c.bf16 %v620_v42, %v612_v41  ;;  %v1054_v46 = vld [vmem:[%s3344_s8 + $0x8] sm:$0xff] }
 0x100   :  { %v1053_v45 = vld [vmem:[%s3344_s8] sm:$0xff]  ;;  %v938_v29 = vld [vmem:[%s3346_s6 + $0xa8] sm:$0xff] }
 0x102   :  { %2016 = vmatpush1.bf16.msra.mxu0 %v2015_v58  ;;  %2032 = vmatpush1.bf16.msra.mxu1 %v2031_v59  ;;  %v573_v58 = vld [vmem:[%s3343_s5 + $0x78] sm:$0xff]  ;;  %v2051_v59 = vpack.c.bf16 %v614_v50, %v606_v49  ;;  %v2102_v49 = vpack.c.bf16 %v1054_v46, %v1053_v45  ;;  %v971_v45 = vld [vmem:[%s3346_s6 + $0x1b0] sm:$0xff] }
 0x103   :  { %2018 = vmatprep.subr.bf16.mxu0 %v2017_v62  ;;  %2034 = vmatprep.subr.bf16.mxu1 %v2033_v63  ;;  %v570_v62 = vld [vmem:[%s3343_s5 + $0x60] sm:$0xff]  ;;  %v2069_v63 = vpack.c.bf16 %v571_v56, %v563_v55  ;;  %v2085_v1 = vpack.c.bf16 %v573_v58, %v565_v57  ;;  %v2117_v56 = vpack.c.bf16 %v1048_v54, %v1047_v53  ;;  %v1058_v58 = vld [vmem:[%s3344_s8 + $0x28] sm:$0xff]  ;;  %v956_v53 = vld [vmem:[%s3346_s6 + $0x138] sm:$0xff] }
 0x104   :  { %v2071_v10 = vpack.c.bf16 %v570_v62, %v562_v61  ;;  %v1057_v57 = vld [vmem:[%s3344_s8 + $0x20] sm:$0xff] }
 0x105   :  { %v2108_v61 = vpack.c.bf16 %v1058_v58, %v1057_v57  ;;  %v973_v57 = vld [vmem:[%s3346_s6 + $0x1c0] sm:$0xff] }
 0x106   :  { %2020 = vmatpush1.bf16.msra.mxu0 %v2019_v8  ;;  %2036 = vmatpush1.bf16.msra.mxu1 %v2035_v9  ;;  %v589_v8 = vld [vmem:[%s3343_s5 + $0xf8] sm:$0xff]  ;;  %v2760_v9 = vadd.f32 %v2523_v20, %v2555_v34  ;;  %v580_v20 = vld [vmem:[%s3343_s5 + $0xb0] sm:$0xff] }
 0x107   :  { %2038 = vmatprep.subr.bf16.mxu0 %v2037_v12  ;;  %2054 = vmatprep.subr.bf16.mxu1 %v2053_v13  ;;  %v578_v12 = vld [vmem:[%s3343_s5 + $0xa0] sm:$0xff]  ;;  %v2089_v15 = vpack.c.bf16 %v589_v8, %v581_v7  ;;  %v588_v34 = vld [vmem:[%s3343_s5 + $0xf0] sm:$0xff]  ;;  %v934_v8 = vld [vmem:[%s3346_s6 + $0x88] sm:$0xff] }
 0x108   :  { %v586_v13 = vld [vmem:[%s3343_s5 + $0xe0] sm:$0xff] }
 0x109   :  { %1586 = vmatmul.mubr.msk.f32.vlgmr.msra.gmra.mrb[4].mxu0 %vm270_vm1, %v2558_v35  ;;  %1587 = vmatmul.mubr.msk.f32.vlgmr.msra.gmra.mrb[4].mxu1 %vm270_vm1, %v2558_v35  ;;  %v933_v7 = vld [vmem:[%s3346_s6 + $0x80] sm:$0xff] }
 0x10a   :  { %2040 = vmatpush1.bf16.msra.mxu0 %v2039_v21  ;;  %2056 = vmatpush1.bf16.msra.mxu1 %v2055_v22  ;;  %v2075_v21 = vpack.c.bf16 %v586_v13, %v578_v12  ;;  %v2091_v22 = vpack.c.bf16 %v588_v34, %v580_v20  ;;  %v918_v12 = vld [vmem:[%s3346_s6 + $0x8] sm:$0xff]  ;;  %v935_v34 = vld [vmem:[%s3346_s6 + $0x90] sm:$0xff] }
 0x10b   :  { %2042 = vmatprep.subr.bf16.mxu0 %v2041_v25  ;;  %2058 = vmatprep.subr.bf16.mxu1 %v2057_v26  ;;  %v2077_v25 = vpack.c.bf16 %v603_v17, %v595_v16  ;;  %v2093_v26 = vpack.c.bf16 %v605_v19, %v597_v18  ;;  %v950_v20 = vld [vmem:[%s3346_s6 + $0x108] sm:$0xff]  ;;  %v936_v17 = vld [vmem:[%s3346_s6 + $0x98] sm:$0xff]  ;;  %v967_v18 = vld [vmem:[%s3346_s6 + $0x190] sm:$0xff] }
 0x10c   :  { %689 = vmatprep.mubr.f32.mxu0 %v2270_v6  ;;  %760 = vmatprep.mubr.f32.mxu1 %v2270_v6  ;;  %v968_v19 = vld [vmem:[%s3346_s6 + $0x198] sm:$0xff] }
 0x10e   :  { %2044 = vmatpush1.bf16.msra.mxu0 %v2043_v33  ;;  %2060 = vmatpush1.bf16.msra.mxu1 %v2059_v36  ;;  %v2079_v33 = vpack.c.bf16 %v602_v24, %v594_v23  ;;  %v2095_v36 = vpack.c.bf16 %v604_v28, %v596_v27  ;;  %v919_v23 = vld [vmem:[%s3346_s6 + $0x10] sm:$0xff]  ;;  %v920_v24 = vld [vmem:[%s3346_s6 + $0x18] sm:$0xff]  ;;  %v937_v28 = vld [vmem:[%s3346_s6 + $0xa0] sm:$0xff] }
 0x10f   :  { %2046 = vmatprep.subr.bf16.mxu0 %v2045_v39  ;;  %2062 = vmatprep.subr.bf16.mxu1 %v2061_v40  ;;  %v2097_v39 = vpack.c.bf16 %v621_v32, %v613_v31  ;;  %v618_v40 = vld [vmem:[%s3343_s5 + $0x1e0] sm:$0xff]  ;;  %v952_v27 = vld [vmem:[%s3346_s6 + $0x118] sm:$0xff]  ;;  %v2133_v31 = vpack.c.bf16 %v938_v29, %v937_v28  ;;  %v979_v29 = vld [vmem:[%s3346_s6 + $0x1f0] sm:$0xff] }
 0x110   :  { %v2083_v43 = vpack.c.bf16 %v618_v40, %v610_v37  ;;  %v969_v32 = vld [vmem:[%s3346_s6 + $0x1a0] sm:$0xff]  ;;  %v954_v40 = vld [vmem:[%s3346_s6 + $0x128] sm:$0xff]  ;;  %v948_v28 = vld [vmem:[%s3346_s6 + $0xf8] sm:$0xff] }
 0x112   :  { %2048 = vmatpush1.bf16.msra.mxu0 %v2047_v47  ;;  %2064 = vmatpush1.bf16.msra.mxu1 %v2063_v48  ;;  %v1045_v47 = vld [vmem:[%s3345_s7] sm:$0xff]  ;;  %v1046_v48 = vld [vmem:[%s3345_s7 + $0x8] sm:$0xff] }
 0x113   :  { %2050 = vmatprep.subr.bf16.mxu0 %v2049_v51  ;;  %2066 = vmatprep.subr.bf16.mxu1 %v2065_v52  ;;  %v2114_v50 = vpack.c.bf16 %v1046_v48, %v1045_v47  ;;  %v1055_v51 = vld [vmem:[%s3344_s8 + $0x10] sm:$0xff]  ;;  %v1056_v52 = vld [vmem:[%s3344_s8 + $0x18] sm:$0xff] }
 0x114   :  { %v2105_v55 = vpack.c.bf16 %v1056_v52, %v1055_v51  ;;  %v972_v47 = vld [vmem:[%s3346_s6 + $0x1b8] sm:$0xff]  ;;  %v923_v48 = vld [vmem:[%s3346_s6 + $0x30] sm:$0xff] }
 0x115   :  { %v955_v52 = vld [vmem:[%s3346_s6 + $0x130] sm:$0xff] }
 0x116   :  { %2052 = vmatpush1.bf16.msra.mxu0 %v2051_v59  ;;  %2068 = vmatpush1.bf16.msra.mxu1 %v2067_v60  ;;  %v1049_v59 = vld [vmem:[%s3345_s7 + $0x20] sm:$0xff]  ;;  %v1050_v60 = vld [vmem:[%s3345_s7 + $0x28] sm:$0xff]  ;;  %v2171_v54 = vpack.c.bf16 %v956_v53, %v955_v52 }
 0x117   :  { %2070 = vmatprep.subr.bf16.mxu0 %v2069_v63  ;;  %2086 = vmatprep.subr.bf16.mxu1 %v2085_v1  ;;  %v2120_v62 = vpack.c.bf16 %v1050_v60, %v1049_v59  ;;  %v1059_v63 = vld [vmem:[%s3344_s8 + $0x30] sm:$0xff]  ;;  %v1060_v1 = vld [vmem:[%s3344_s8 + $0x38] sm:$0xff]  ;;  %v974_v59 = vld [vmem:[%s3346_s6 + $0x1c8] sm:$0xff] }
 0x118   :  { %v2111_v4 = vpack.c.bf16 %v1060_v1, %v1059_v63  ;;  %v925_v60 = vld [vmem:[%s3346_s6 + $0x40] sm:$0xff] }
 0x119   :  { %1588 = vmatmul.mubr.msk.f32.vlgmr.msra.gmra.mrb[6].mxu0 %vm270_vm1, %v2760_v9  ;;  %1589 = vmatmul.mubr.msk.f32.vlgmr.msra.gmra.mrb[6].mxu1 %vm270_vm1, %v2760_v9  ;;  %v957_v1 = vld [vmem:[%s3346_s6 + $0x140] sm:$0xff] }
 0x11a   :  { %2072 = vmatpush1.bf16.msra.mxu0 %v2071_v10  ;;  %2088 = vmatpush1.bf16.msra.mxu1 %v2087_v11  ;;  %v965_v10 = vld [vmem:[%s3346_s6 + $0x180] sm:$0xff]  ;;  %v2125_v11 = vpack.c.bf16 %v934_v8, %v933_v7  ;;  %v975_v7 = vld [vmem:[%s3346_s6 + $0x1d0] sm:$0xff]  ;;  %v976_v8 = vld [vmem:[%s3346_s6 + $0x1d8] sm:$0xff] }
 0x11b   :  { %2074 = vmatprep.subr.bf16.mxu0 %v2073_v14  ;;  %2090 = vmatprep.subr.bf16.mxu1 %v2089_v15  ;;  %v949_v15 = vld [vmem:[%s3346_s6 + $0x100] sm:$0xff] }
 0x11c   :  { %831 = vmatprep.mubr.f32.mxu0 %v2270_v6  ;;  %902 = vmatprep.mubr.f32.mxu1 %v2270_v6  ;;  %v2159_v16 = vpack.c.bf16 %v950_v20, %v949_v15  ;;  %v945_v15 = vld [vmem:[%s3346_s6 + $0xe0] sm:$0xff]  ;;  %v946_v20 = vld [vmem:[%s3346_s6 + $0xe8] sm:$0xff] }
 0x11e   :  { %2076 = vmatpush1.bf16.msra.mxu0 %v2075_v21  ;;  %2092 = vmatpush1.bf16.msra.mxu1 %v2091_v22  ;;  %v2129_v21 = vpack.c.bf16 %v936_v17, %v935_v34  ;;  %v2161_v22 = vpack.c.bf16 %v968_v19, %v967_v18  ;;  %v977_v17 = vld [vmem:[%s3346_s6 + $0x1e0] sm:$0xff]  ;;  %v978_v18 = vld [vmem:[%s3346_s6 + $0x1e8] sm:$0xff] }
 0x11f   :  { %2078 = vmatprep.subr.bf16.mxu0 %v2077_v25  ;;  %2094 = vmatprep.subr.bf16.mxu1 %v2093_v26  ;;  %v951_v25 = vld [vmem:[%s3346_s6 + $0x110] sm:$0xff]  ;;  %v2131_v26 = vpack.c.bf16 %v920_v24, %v919_v23  ;;  %v929_v19 = vld [vmem:[%s3346_s6 + $0x60] sm:$0xff]  ;;  %v962_v24 = vld [vmem:[%s3346_s6 + $0x168] sm:$0xff] }
 0x120   :  { %v2163_v30 = vpack.c.bf16 %v952_v27, %v951_v25  ;;  %v961_v23 = vld [vmem:[%s3346_s6 + $0x160] sm:$0xff]  ;;  %v947_v27 = vld [vmem:[%s3346_s6 + $0xf0] sm:$0xff] }
 0x122   :  { %2080 = vmatpush1.bf16.msra.mxu0 %v2079_v33  ;;  %2096 = vmatpush1.bf16.msra.mxu1 %v2095_v36  ;;  %v970_v33 = vld [vmem:[%s3346_s6 + $0x1a8] sm:$0xff]  ;;  %v921_v36 = vld [vmem:[%s3346_s6 + $0x20] sm:$0xff] }
 0x123   :  { %2082 = vmatprep.subr.bf16.mxu0 %v2081_v38  ;;  %2098 = vmatprep.subr.bf16.mxu1 %v2097_v39  ;;  %v2165_v37 = vpack.c.bf16 %v970_v33, %v969_v32  ;;  %v922_v38 = vld [vmem:[%s3346_s6 + $0x28] sm:$0xff]  ;;  %v953_v39 = vld [vmem:[%s3346_s6 + $0x120] sm:$0xff]  ;;  %v931_v32 = vld [vmem:[%s3346_s6 + $0x70] sm:$0xff] }
 0x124   :  { %v2135_v41 = vpack.c.bf16 %v922_v38, %v921_v36  ;;  %v2167_v42 = vpack.c.bf16 %v954_v40, %v953_v39  ;;  %v932_v33 = vld [vmem:[%s3346_s6 + $0x78] sm:$0xff]  ;;  %v963_v38 = vld [vmem:[%s3346_s6 + $0x170] sm:$0xff] }
 0x125   :  { %v964_v39 = vld [vmem:[%s3346_s6 + $0x178] sm:$0xff] }
 0x126   :  { %2084 = vmatpush1.bf16.msra.mxu0 %v2083_v43  ;;  %2100 = vmatpush1.bf16.msra.mxu1 %v2099_v44  ;;  %v939_v43 = vld [vmem:[%s3346_s6 + $0xb0] sm:$0xff]  ;;  %v940_v44 = vld [vmem:[%s3346_s6 + $0xb8] sm:$0xff]  ;;  %v2187_v40 = vpack.c.bf16 %v964_v39, %v963_v38 }
 0x127   :  { %2101 = vmatprep.subr.bf16.mxu0 %v2268_v0  ;;  %2113 = vmatprep.subr.bf16.mxu1 %v2268_v0  ;;  %v2137_v46 = vpack.c.bf16 %v940_v44, %v939_v43  ;;  %v1029_v43 = vld [vmem:[%s3346_s6 + $0x380] sm:$0xff]  ;;  %v1019_v39 = vld [vmem:[%s3346_s6 + $0x330] sm:$0xff] }
 0x129   :  { %1590 = vmatmul.mubr.msk.f32.vlgmr.msra.gmra.mrb[8].mxu0 %vm270_vm1, %v2760_v9  ;;  %1591 = vmatmul.mubr.msk.f32.vlgmr.msra.gmra.mrb[8].mxu1 %vm270_vm1, %v2760_v9 }
 0x12a   :  { %2103 = vmatpush3.bf16.msra.mxu0 %v2102_v49  ;;  %2115 = vmatpush3.bf16.msra.mxu1 %v2114_v50  ;;  %v924_v49 = vld [vmem:[%s3346_s6 + $0x38] sm:$0xff]  ;;  %v2169_v50 = vpack.c.bf16 %v972_v47, %v971_v45  ;;  %v1030_v45 = vld [vmem:[%s3346_s6 + $0x388] sm:$0xff] }
 0x12b   :  { %2104 = vmatprep.subr.bf16.mxu0 %v2268_v0  ;;  %2116 = vmatprep.subr.bf16.mxu1 %v2268_v0  ;;  %v2139_v51 = vpack.c.bf16 %v924_v49, %v923_v48 }
 0x12c   :  { %1884 = vmatprep.mubr.msk.f32.mxu0 %vm2269_vm0, %v2270_v6  ;;  %1903 = vmatprep.mubr.msk.f32.mxu1 %vm2269_vm0, %v2270_v6 }
 0x12e   :  { %2106 = vmatpush3.bf16.msra.mxu0 %v2105_v55  ;;  %2118 = vmatpush3.bf16.msra.mxu1 %v2117_v56  ;;  %v941_v55 = vld [vmem:[%s3346_s6 + $0xc0] sm:$0xff]  ;;  %v942_v56 = vld [vmem:[%s3346_s6 + $0xc8] sm:$0xff] }
 0x12f   :  { %2107 = vmatprep.subr.bf16.mxu0 %v2268_v0  ;;  %2119 = vmatprep.subr.bf16.mxu1 %v2268_v0  ;;  %v2141_v58 = vpack.c.bf16 %v942_v56, %v941_v55  ;;  %v981_v55 = vld [vmem:[%s3346_s6 + $0x200] sm:$0xff]  ;;  %v982_v56 = vld [vmem:[%s3346_s6 + $0x208] sm:$0xff] }
 0x132   :  { %2109 = vmatpush3.bf16.msra.mxu0 %v2108_v61  ;;  %2121 = vmatpush3.bf16.msra.mxu1 %v2120_v62  ;;  %v926_v61 = vld [vmem:[%s3346_s6 + $0x48] sm:$0xff]  ;;  %v2173_v62 = vpack.c.bf16 %v974_v59, %v973_v57  ;;  %v1013_v57 = vld [vmem:[%s3346_s6 + $0x300] sm:$0xff]  ;;  %v999_v59 = vld [vmem:[%s3346_s6 + $0x290] sm:$0xff] }
 0x133   :  { %2110 = vmatprep.subr.bf16.mxu0 %v2268_v0  ;;  %2122 = vmatprep.subr.bf16.mxu1 %v2268_v0  ;;  %v2143_v63 = vpack.c.bf16 %v926_v61, %v925_v60 }
 0x136   :  { %2112 = vmatpush3.bf16.msra.mxu0 %v2111_v4  ;;  %2124 = vmatpush3.bf16.msra.mxu1 %v2123_v5  ;;  %v2175_v4 = vpack.c.bf16 %v958_v2, %v957_v1  ;;  %v944_v5 = vld [vmem:[%s3346_s6 + $0xd8] sm:$0xff] }
 0x137   :  { %2126 = vmatprep.subr.bf16.mxu0 %v2125_v11  ;;  %v2177_v11 = vpack.c.bf16 %v976_v8, %v975_v7  ;;  %v1032_v1 = vld [vmem:[%s3346_s6 + $0x398] sm:$0xff] }
 0x139   :  { %1885 = vmatmul.mubr.msk.f32.vlgmr.msra.gmra.mrb[10].mxu0 %vm270_vm1, %v2760_v9  ;;  %1904 = vmatmul.mubr.msk.f32.vlgmr.msra.gmra.mrb[10].mxu1 %vm270_vm1, %v2558_v35  ;;  %v966_v9 = vld [vmem:[%s3346_s6 + $0x188] sm:$0xff]  ;;  %v917_v35 = vld [vmem:[%s3346_s6] sm:$0xff] }
 0x13a   :  { %v2157_v13 = vpack.c.bf16 %v966_v9, %v965_v10  ;;  %v2127_v14 = vpack.c.bf16 %v918_v12, %v917_v35  ;;  %v2145_v10 = vpack.c.bf16 %v944_v5, %v943_v3  ;;  %v927_v9 = vld [vmem:[%s3346_s6 + $0x50] sm:$0xff]  ;;  %v928_v35 = vld [vmem:[%s3346_s6 + $0x58] sm:$0xff] }
 0x13b   :  { %v959_v12 = vld [vmem:[%s3346_s6 + $0x150] sm:$0xff] }
 0x13c   :  { %2158 = vmatprep.subr.bf16.mxu1 %v2157_v13  ;;  %2128 = vmatpush3.bf16.msra.mxu0 %v2127_v14  ;;  %v2147_v13 = vpack.c.bf16 %v928_v35, %v927_v9  ;;  %v960_v14 = vld [vmem:[%s3346_s6 + $0x158] sm:$0xff]  ;;  %v983_v9 = vld [vmem:[%s3346_s6 + $0x210] sm:$0xff] }
 0x13d   :  { %2160 = vmatpush3.bf16.msra.mxu1 %v2159_v16  ;;  %2130 = vmatprep.subr.bf16.mxu0 %v2129_v21  ;;  %v2179_v34 = vpack.c.bf16 %v960_v14, %v959_v12  ;;  %v2149_v16 = vpack.c.bf16 %v946_v20, %v945_v15  ;;  %v2181_v21 = vpack.c.bf16 %v978_v18, %v977_v17  ;;  %v984_v35 = vld [vmem:[%s3346_s6 + $0x218] sm:$0xff]  ;;  %v1015_v14 = vld [vmem:[%s3346_s6 + $0x310] sm:$0xff]  ;;  %v1001_v20 = vld [vmem:[%s3346_s6 + $0x2a0] sm:$0xff] }
 0x13e   :  { %2162 = vmatprep.subr.bf16.mxu1 %v2161_v22  ;;  %v930_v22 = vld [vmem:[%s3346_s6 + $0x68] sm:$0xff]  ;;  %v1016_v15 = vld [vmem:[%s3346_s6 + $0x318] sm:$0xff]  ;;  %v2195_v18 = vpack.c.bf16 %v984_v35, %v983_v9  ;;  %v1009_v9 = vld [vmem:[%s3346_s6 + $0x2e0] sm:$0xff] }
 0x13f   :  { %v2151_v25 = vpack.c.bf16 %v930_v22, %v929_v19  ;;  %v1034_v17 = vld [vmem:[%s3346_s6 + $0x3a8] sm:$0xff]  ;;  %v2227_v19 = vpack.c.bf16 %v1016_v15, %v1015_v14 }
 0x140   :  { %2132 = vmatpush3.bf16.msra.mxu0 %v2131_v26  ;;  %v2183_v26 = vpack.c.bf16 %v962_v24, %v961_v23  ;;  %v986_v22 = vld [vmem:[%s3346_s6 + $0x228] sm:$0xff] }
 0x141   :  { %2164 = vmatpush3.bf16.msra.mxu1 %v2163_v30  ;;  %2134 = vmatprep.subr.bf16.mxu0 %v2133_v31  ;;  %v2153_v30 = vpack.c.bf16 %v948_v28, %v947_v27  ;;  %v980_v31 = vld [vmem:[%s3346_s6 + $0x1f8] sm:$0xff]  ;;  %v1003_v27 = vld [vmem:[%s3346_s6 + $0x2b0] sm:$0xff]  ;;  %v1010_v35 = vld [vmem:[%s3346_s6 + $0x2e8] sm:$0xff] }
 0x142   :  { %2166 = vmatprep.subr.bf16.mxu1 %v2165_v37  ;;  %v2185_v36 = vpack.c.bf16 %v980_v31, %v979_v29  ;;  %v2155_v37 = vpack.c.bf16 %v932_v33, %v931_v32  ;;  %v1004_v28 = vld [vmem:[%s3346_s6 + $0x2b8] sm:$0xff]  ;;  %v1035_v29 = vld [vmem:[%s3346_s6 + $0x3b0] sm:$0xff] }
 0x143   :  { %v987_v33 = vld [vmem:[%s3346_s6 + $0x230] sm:$0xff] }
 0x144   :  { %2136 = vmatpush3.bf16.msra.mxu0 %v2135_v41  ;;  %v997_v41 = vld [vmem:[%s3346_s6 + $0x280] sm:$0xff] }
 0x145   :  { %2168 = vmatpush3.bf16.msra.mxu1 %v2167_v42  ;;  %2138 = vmatprep.subr.bf16.mxu0 %v2137_v46  ;;  %v998_v42 = vld [vmem:[%s3346_s6 + $0x288] sm:$0xff]  ;;  %v2221_v46 = vpack.c.bf16 %v1030_v45, %v1029_v43  ;;  %v1037_v43 = vld [vmem:[%s3346_s6 + $0x3c0] sm:$0xff] }
 0x146   :  { %2170 = vmatprep.subr.bf16.mxu1 %v2169_v50  ;;  %v2189_v44 = vpack.c.bf16 %v998_v42, %v997_v41  ;;  %v1005_v41 = vld [vmem:[%s3346_s6 + $0x2c0] sm:$0xff]  ;;  %v1006_v42 = vld [vmem:[%s3346_s6 + $0x2c8] sm:$0xff] }
 0x148   :  { %2140 = vmatpush3.bf16.msra.mxu0 %v2139_v51 }
 0x149   :  { %2172 = vmatpush3.bf16.msra.mxu1 %v2171_v54  ;;  %2142 = vmatprep.subr.bf16.mxu0 %v2141_v58  ;;  %v1014_v58 = vld [vmem:[%s3346_s6 + $0x308] sm:$0xff] }
 0x14a   :  { %2174 = vmatprep.subr.bf16.mxu1 %v2173_v62  ;;  %v1000_v62 = vld [vmem:[%s3346_s6 + $0x298] sm:$0xff] }
 0x14b   :  { %v2193_v12 = vpack.c.bf16 %v1000_v62, %v999_v59  ;;  %v1040_v62 = vld [vmem:[%s3346_s6 + $0x3d8] sm:$0xff] }
 0x14c   :  { %2144 = vmatpush3.bf16.msra.mxu0 %v2143_v63  ;;  %v1031_v63 = vld [vmem:[%s3346_s6 + $0x390] sm:$0xff] }
 0x14d   :  { %2176 = vmatpush3.bf16.msra.mxu1 %v2175_v4  ;;  %2146 = vmatprep.subr.bf16.mxu0 %v2145_v10  ;;  %v2191_v10 = vpack.c.bf16 %v982_v56, %v981_v55  ;;  %v1021_v55 = vld [vmem:[%s3346_s6 + $0x340] sm:$0xff]  ;;  %v1022_v56 = vld [vmem:[%s3346_s6 + $0x348] sm:$0xff] }
 0x14e   :  { %2178 = vmatprep.subr.bf16.mxu1 %v2177_v11  ;;  %v2223_v11 = vpack.c.bf16 %v1014_v58, %v1013_v57  ;;  %v1007_v57 = vld [vmem:[%s3346_s6 + $0x2d0] sm:$0xff] }
 0x150   :  { %2148 = vmatpush3.bf16.msra.mxu0 %v2147_v13  ;;  %v2225_v13 = vpack.c.bf16 %v1032_v1, %v1031_v63 }
 0x151   :  { %2180 = vmatpush3.bf16.msra.mxu1 %v2179_v34  ;;  %2150 = vmatprep.subr.bf16.mxu0 %v2149_v16  ;;  %v1002_v34 = vld [vmem:[%s3346_s6 + $0x2a8] sm:$0xff]  ;;  %v1033_v16 = vld [vmem:[%s3346_s6 + $0x3a0] sm:$0xff] }
 0x152   :  { %2182 = vmatprep.subr.bf16.mxu1 %v2181_v21  ;;  %v985_v21 = vld [vmem:[%s3346_s6 + $0x220] sm:$0xff]  ;;  %v2197_v23 = vpack.c.bf16 %v1002_v34, %v1001_v20  ;;  %v2229_v24 = vpack.c.bf16 %v1034_v17, %v1033_v16  ;;  %v994_v34 = vld [vmem:[%s3346_s6 + $0x268] sm:$0xff]  ;;  %v2213_v16 = vpack.c.bf16 %v1010_v35, %v1009_v9 }
 0x153   :  { %v2199_v31 = vpack.c.bf16 %v986_v22, %v985_v21  ;;  %v993_v20 = vld [vmem:[%s3346_s6 + $0x260] sm:$0xff]  ;;  %v1011_v21 = vld [vmem:[%s3346_s6 + $0x2f0] sm:$0xff]  ;;  %v1012_v22 = vld [vmem:[%s3346_s6 + $0x2f8] sm:$0xff] }
 0x154   :  { %2152 = vmatpush3.bf16.msra.mxu0 %v2151_v25  ;;  %v1017_v25 = vld [vmem:[%s3346_s6 + $0x320] sm:$0xff] }
 0x155   :  { %2184 = vmatpush3.bf16.msra.mxu1 %v2183_v26  ;;  %2154 = vmatprep.subr.bf16.mxu0 %v2153_v30  ;;  %v1018_v26 = vld [vmem:[%s3346_s6 + $0x328] sm:$0xff]  ;;  %v1036_v30 = vld [vmem:[%s3346_s6 + $0x3b8] sm:$0xff] }
 0x156   :  { %2186 = vmatprep.subr.bf16.mxu1 %v2185_v36  ;;  %v2231_v32 = vpack.c.bf16 %v1018_v26, %v1017_v25  ;;  %v988_v36 = vld [vmem:[%s3346_s6 + $0x238] sm:$0xff]  ;;  %v2233_v38 = vpack.c.bf16 %v1036_v30, %v1035_v29  ;;  %v2215_v25 = vpack.c.bf16 %v994_v34, %v993_v20 }
 0x157   :  { %v2203_v45 = vpack.c.bf16 %v988_v36, %v987_v33  ;;  %v996_v30 = vld [vmem:[%s3346_s6 + $0x278] sm:$0xff] }
 0x158   :  { %2156 = vmatpush3.bf16.msra.mxu0 %v2155_v37  ;;  %v2201_v37 = vpack.c.bf16 %v1004_v28, %v1003_v27  ;;  %v995_v27 = vld [vmem:[%s3346_s6 + $0x270] sm:$0xff]  ;;  %v2217_v28 = vpack.c.bf16 %v1012_v22, %v1011_v21 }
 0x159   :  { %2188 = vmatpush3.bf16.msra.mxu1 %v2187_v40  ;;  %2190 = vmatprep.subr.bf16.mxu0 %v2189_v44  ;;  %v1020_v40 = vld [vmem:[%s3346_s6 + $0x338] sm:$0xff]  ;;  %v1038_v44 = vld [vmem:[%s3346_s6 + $0x3c8] sm:$0xff]  ;;  %v2219_v33 = vpack.c.bf16 %v996_v30, %v995_v27 }
 0x15a   :  { %2222 = vmatprep.subr.bf16.mxu1 %v2221_v46  ;;  %v2235_v46 = vpack.c.bf16 %v1020_v40, %v1019_v39 }
 0x1cc   :  { %v340_v47 = vpop.f32.mrb[2].mxu0  ;;  %v411_v48 = vpop.f32.mrb[2].mxu1 }
 0x1cd   :  { %v342_v49 = vpop.f32.mrb[3].mxu0  ;;  %v413_v50 = vpop.f32.mrb[3].mxu1 }
 0x1dc   :  { %v3100_v51 = vpop.f32.mrb[4].mxu0  ;;  %v3102_v52 = vpop.f32.mrb[4].mxu1 }
 0x1dd   :  { %v3104_v53 = vpop.f32.mrb[5].mxu0  ;;  %v3106_v54 = vpop.f32.mrb[5].mxu1 }
 0x1ec   :  { %v691_v60 = vpop.f32.mrb[6].mxu0  ;;  %v762_v61 = vpop.f32.mrb[6].mxu1 }
 0x1ed   :  { %v909_v2 = vmul.f32 %v691_v60, %v340_v47  ;;  %v911_v3 = vmul.f32 %v762_v61, %v411_v48  ;;  %v693_v4 = vpop.f32.mrb[7].mxu0  ;;  %v764_v5 = vpop.f32.mrb[7].mxu1  ;;  %v989_v47 = vld [vmem:[%s3346_s6 + $0x240] sm:$0xff]  ;;  %v990_v48 = vld [vmem:[%s3346_s6 + $0x248] sm:$0xff]  ;;  %v1008_v60 = vld [vmem:[%s3346_s6 + $0x2d8] sm:$0xff] }
 0x1ee   :  { %v910_v7 = vmul.f32 %v693_v4, %v342_v49  ;;  %v912_v8 = vmul.f32 %v764_v5, %v413_v50  ;;  %v2205_v49 = vpack.c.bf16 %v1006_v42, %v1005_v41  ;;  %v2237_v50 = vpack.c.bf16 %v1038_v44, %v1037_v43  ;;  %v1039_v61 = vld [vmem:[%s3346_s6 + $0x3d0] sm:$0xff]  ;;  %v1490_v42 = vld [vmem:[%s3347_s10] sm:$0xff]  ;;  %v1491_v43 = vld [vmem:[%s3347_s10 + $0x8] sm:$0xff] }
 0x1ef   :  { %v2207_v4 = vpack.c.bf16 %v990_v48, %v989_v47  ;;  %v2254_v44 = vpack.c.bf16 %v1491_v43, %v1490_v42  ;;  %v1494_v47 = vld [vmem:[%s3347_s10 + $0x20] sm:$0xff]  ;;  %v1495_v48 = vld [vmem:[%s3347_s10 + $0x28] sm:$0xff] }
 0x1f0   :  { %1265 = vmatprep.mubr.f32.mxu0 %v910_v7  ;;  %1335 = vmatprep.mubr.f32.mxu1 %v912_v8  ;;  %v2239_v8 = vpack.c.bf16 %v1022_v56, %v1021_v55  ;;  %v1497_v55 = vld [vmem:[%s3347_s10 + $0x38] sm:$0xff] }
 0x1f1   :  { %1266 = vmatmul.mubr.f32.vlgmr.msra.gmra.mrb[12].mxu0 %v909_v2  ;;  %1336 = vmatmul.mubr.f32.vlgmr.msra.gmra.mrb[12].mxu1 %v911_v3 }
 0x1f2   :  { %2192 = vmatpush3.bf16.msra.mxu0 %v2191_v10  ;;  %2224 = vmatpush3.bf16.msra.mxu1 %v2223_v11  ;;  %v991_v10 = vld [vmem:[%s3346_s6 + $0x250] sm:$0xff]  ;;  %v2241_v11 = vpack.c.bf16 %v1040_v62, %v1039_v61 }
 0x1f3   :  { %2194 = vmatprep.subr.bf16.mxu0 %v2193_v12  ;;  %2226 = vmatprep.subr.bf16.mxu1 %v2225_v13  ;;  %v1041_v12 = vld [vmem:[%s3346_s6 + $0x3e0] sm:$0xff]  ;;  %v1042_v13 = vld [vmem:[%s3346_s6 + $0x3e8] sm:$0xff] }
 0x1f4   :  { %v2245_v17 = vpack.c.bf16 %v1042_v13, %v1041_v12 }
 0x1f6   :  { %2196 = vmatpush3.bf16.msra.mxu0 %v2195_v18  ;;  %2228 = vmatpush3.bf16.msra.mxu1 %v2227_v19  ;;  %v1025_v18 = vld [vmem:[%s3346_s6 + $0x360] sm:$0xff]  ;;  %v1026_v19 = vld [vmem:[%s3346_s6 + $0x368] sm:$0xff] }
 0x1f7   :  { %2198 = vmatprep.subr.bf16.mxu0 %v2197_v23  ;;  %2230 = vmatprep.subr.bf16.mxu1 %v2229_v24  ;;  %v1043_v23 = vld [vmem:[%s3346_s6 + $0x3f0] sm:$0xff]  ;;  %v1044_v24 = vld [vmem:[%s3346_s6 + $0x3f8] sm:$0xff]  ;;  %v2247_v26 = vpack.c.bf16 %v1026_v19, %v1025_v18 }
 0x1f8   :  { %v2249_v29 = vpack.c.bf16 %v1044_v24, %v1043_v23 }
 0x1fa   :  { %2200 = vmatpush3.bf16.msra.mxu0 %v2199_v31  ;;  %2232 = vmatpush3.bf16.msra.mxu1 %v2231_v32  ;;  %v1027_v31 = vld [vmem:[%s3346_s6 + $0x370] sm:$0xff]  ;;  %v1028_v32 = vld [vmem:[%s3346_s6 + $0x378] sm:$0xff] }
 0x1fb   :  { %2202 = vmatprep.subr.bf16.mxu0 %v2201_v37  ;;  %2234 = vmatprep.subr.bf16.mxu1 %v2233_v38  ;;  %v2251_v36 = vpack.c.bf16 %v1028_v32, %v1027_v31 }
 0x1fc   :  { %v833_v58 = vpop.f32.mrb[8].mxu0  ;;  %v904_v59 = vpop.f32.mrb[8].mxu1 }
 0x1fd   :  { %v3229_v63 = vmul.f32 %v833_v58, %v3100_v51  ;;  %v3232_v1 = vmul.f32 %v904_v59, %v3102_v52  ;;  %v835_v2 = vpop.f32.mrb[9].mxu0  ;;  %v906_v3 = vpop.f32.mrb[9].mxu1  ;;  %v992_v51 = vld [vmem:[%s3346_s6 + $0x258] sm:$0xff]  ;;  %v2209_v52 = vpack.c.bf16 %v1008_v60, %v1007_v57 }
 0x1fe   :  { %v914_v5 = vmul.f32 %v835_v2, %v3104_v53  ;;  %v916_v7 = vmul.f32 %v906_v3, %v3106_v54  ;;  %2204 = vmatpush3.bf16.msra.mxu0 %v2203_v45  ;;  %2236 = vmatpush3.bf16.msra.mxu1 %v2235_v46  ;;  %v1023_v53 = vld [vmem:[%s3346_s6 + $0x350] sm:$0xff]  ;;  %v1024_v54 = vld [vmem:[%s3346_s6 + $0x358] sm:$0xff]  ;;  %v2211_v14 = vpack.c.bf16 %v992_v51, %v991_v10  ;;  %v1594_v10 = vld [vmem:[%s3348_s9] ss:$0 sm:$0xff] }
 0x1ff   :  { %2206 = vmatprep.subr.bf16.mxu0 %v2205_v49  ;;  %2238 = vmatprep.subr.bf16.mxu1 %v2237_v50  ;;  %v2243_v15 = vpack.c.bf16 %v1024_v54, %v1023_v53  ;;  %v1492_v45 = vld [vmem:[%s3347_s10 + $0x10] sm:$0xff]  ;;  %v2260_v49 = vpack.c.bf16 %v1495_v48, %v1494_v47  ;;  %v1595_v53 = vld [vmem:[%s3349_s11] ss:$0 sm:$0xff] }
 0x200   :  { %1405 = vmatprep.mubr.f32.mxu0 %v914_v5  ;;  %1475 = vmatprep.mubr.f32.mxu1 %v916_v7  ;;  %v1496_v50 = vld [vmem:[%s3347_s10 + $0x30] sm:$0xff] }
 0x201   :  { %v2263_v56 = vpack.c.bf16 %v1497_v55, %v1496_v50 }
 0x202   :  { %2208 = vmatpush3.bf16.msra.mxu0 %v2207_v4  ;;  %2240 = vmatpush3.bf16.msra.mxu1 %v2239_v8 }
 0x203   :  { %2210 = vmatprep.subr.bf16.mxu0 %v2209_v52  ;;  %2242 = vmatprep.subr.bf16.mxu1 %v2241_v11 }
 0x206   :  { %2212 = vmatpush3.bf16.msra.mxu0 %v2211_v14  ;;  %2244 = vmatpush3.bf16.msra.mxu1 %v2243_v15 }
 0x207   :  { %2214 = vmatprep.subr.bf16.mxu0 %v2213_v16  ;;  %2246 = vmatprep.subr.bf16.mxu1 %v2245_v17 }
 0x20a   :  { %2216 = vmatpush3.bf16.msra.mxu0 %v2215_v25  ;;  %2248 = vmatpush3.bf16.msra.mxu1 %v2247_v26 }
 0x20b   :  { %2218 = vmatprep.subr.bf16.mxu0 %v2217_v28  ;;  %2250 = vmatprep.subr.bf16.mxu1 %v2249_v29 }
 0x20c   :  { %v1127_v37 = vpop.f32.mrb[10].mxu0  ;;  %v1197_v38 = vpop.f32.mrb[10].mxu1 }
 0x20d   :  { %v1198_v39 = vadd.f32 %v1197_v38, %v1127_v37  ;;  %v1886_v40 = vpop.f32.mrb[11].mxu0  ;;  %v1905_v41 = vpop.f32.mrb[11].mxu1 }
 0x20e   :  { %2220 = vmatpush3.bf16.msra.mxu0 %v2219_v33  ;;  %2252 = vmatpush3.bf16.msra.mxu1 %v2251_v36 }
 0x20f   :  { %2253 = vmatprep.subr.bf16.mxu0 %v2268_v0 }
 0x211   :  { %1406 = vmatmul.mubr.f32.vlgmr.msra.gmra.mrb[14].mxu0 %v3229_v63  ;;  %1476 = vmatmul.mubr.f32.vlgmr.msra.gmra.mrb[14].mxu1 %v3232_v1 }
 0x212   :  { %1922 = vmatprep.mubr.msk.f32.mxu0 %vm2269_vm0, %v2270_v6  ;;  %2255 = vmatpush3.bf16.msra.mxu0 %v2254_v44  ;;  %v1493_v6 = vld [vmem:[%s3347_s10 + $0x18] sm:$0xff] }
 0x213   :  { %2256 = vmatprep.subr.bf16.mxu0 %v2268_v0  ;;  %v2257_v46 = vpack.c.bf16 %v1493_v6, %v1492_v45 }
 0x216   :  { %2258 = vmatpush3.bf16.msra.mxu0 %v2257_v46 }
 0x217   :  { %2259 = vmatprep.subr.bf16.mxu0 %v2268_v0 }
 0x21a   :  { %2261 = vmatpush3.bf16.msra.mxu0 %v2260_v49 }
 0x21b   :  { %2262 = vmatprep.subr.bf16.mxu0 %v2268_v0 }
 0x21e   :  { %2264 = vmatpush3.bf16.msra.mxu0 %v2263_v56 }
 0x2c4   :  { %v1681_v57 = vpop.f32.mrb[12].mxu0  ;;  %v1716_v58 = vpop.f32.mrb[12].mxu1 }
 0x2c5   :  { %v1682_v59 = vpop.f32.mrb[13].mxu0  ;;  %v1717_v60 = vpop.f32.mrb[13].mxu1 }
 0x2c6   :  { %v1683_v61 = vadd.f32 %v1682_v59, %v1681_v57  ;;  %v1718_v62 = vadd.f32 %v1717_v60, %v1716_v58 }
 0x2c8   :  { %v1268_v63 = vadd.f32 %v1683_v61, %v1198_v39 }
 0x2ca   :  { %v1338_v1 = vadd.f32 %v1718_v62, %v1268_v63 }
 0x2e4   :  { %v1751_v2 = vpop.f32.mrb[14].mxu0  ;;  %v1786_v0 = vpop.f32.mrb[14].mxu1 }
 0x2e5   :  { %v1752_v3 = vpop.f32.mrb[15].mxu0  ;;  %v1787_v4 = vpop.f32.mrb[15].mxu1 }
 0x2e6   :  { %v1753_v5 = vadd.f32 %v1752_v3, %v1751_v2  ;;  %v1788_v7 = vadd.f32 %v1787_v4, %v1786_v0 }
 0x2e8   :  { %v1408_v8 = vadd.f32 %v1753_v5, %v1338_v1 }
 0x2ea   :  { %v1478_v51 = vadd.f32 %v1788_v7, %v1408_v8 }
 0x2ec   :  { %v1488_v52 = vadd.f32 %v1594_v10, %v1478_v51 }
 0x2ee   :  { %v1489_v11 = vmax.f32 %v1488_v52, 0.0 }
 0x2f0   :  { %1923 = vmatmul.mubr.msk.f32.vlgmr.msra.gmra.mrb[16].mxu0 %vm270_vm1, %v1489_v11 }
 0x3c3   :  { %v1574_v54 = vpop.f32.mrb[16].mxu0 }
 0x3c4   :  { %v1575_v9 = vadd.f32 %v1595_v53, %v1574_v54  ;;  %v1924_v35 = vpop.f32.mrb[17].mxu0 }
 0x3c6   :  { %1578 = vst [vmem:[%s3350_s12] sm:$0xff] %v1575_v9 }

</bundles_post_ra>
